<compile_context>
chip_gen: v5e
topology: v5e:2x2
jax: 0.10.0
libtpu: 0.0.40
codegen_flags: <defaults>
</compile_context>

<pallas_src>
import functools

import jax
import jax.numpy as jnp
from jax.experimental import pallas as pl
from jax.experimental.pallas import tpu as pltpu

EPS = 1e-6
_HAS_BUFFERED = hasattr(pl, "Buffered")


# ------------------------------ fused kernel --------------------------------

def _encoder_layer_kernel(x_ref, p_ref, w_ref, w1_ref, b1_ref, w2_ref,
                          o_ref, x1_ref, *, dff_tile):
    """Fused pre-norm encoder block on one (tm, D) row tile.

    p_ref rows: [a2_0, b2_0, attn_bias, a2_1, b2_1, ffn_bias2]  (f32, (6, D))
    w_ref:  (D, D)  bf16 attn-linear weight
    w1_ref: (D, DFF) bf16, b1_ref: (1, DFF) f32, w2_ref: (DFF, D) bf16
    x1_ref: (tm, D) f32 VMEM scratch holding the sublayer-0 output.
    """
    D = x_ref.shape[-1]
    DFF = w1_ref.shape[-1]

    def layernorm(x, a2, b2):
        # PyTorch LayerNorm reference: unbiased std, (std + eps) denominator.
        mean = jnp.mean(x, axis=-1, keepdims=True)
        c = x - mean
        var_unbiased = jnp.sum(c * c, axis=-1, keepdims=True) / (D - 1)
        inv = pl.reciprocal(jnp.sqrt(var_unbiased) + EPS, approx=True)  # EUP
        return (c * inv) * a2 + b2

    # --- sublayer[0]: x + Linear(LayerNorm(x))  (self_attn stand-in) ---
    n0 = layernorm(x_ref[...].astype(jnp.float32), p_ref[0:1, :], p_ref[1:2, :])
    z0 = jnp.dot(n0.astype(jnp.bfloat16), w_ref[...],
                 preferred_element_type=jnp.float32) + p_ref[2:3, :]
    x1_ref[...] = x_ref[...].astype(jnp.float32) + z0     # keep x1 in VMEM

    # --- sublayer[1]: x1 + FFN(LayerNorm(x1)) ---
    n1 = layernorm(x1_ref[...], p_ref[3:4, :], p_ref[4:5, :]).astype(jnp.bfloat16)

    z1 = jnp.zeros((x_ref.shape[0], D), jnp.float32)
    n_chunks = DFF // dff_tile
    for j in range(n_chunks):                              # static unroll
        sl = slice(j * dff_tile, (j + 1) * dff_tile)
        h = jnp.dot(n1, w1_ref[:, sl],
                    preferred_element_type=jnp.float32) + b1_ref[:, sl]
        h = jnp.maximum(h, 0.0)                            # ReLU
        z1 = z1 + jnp.dot(h.astype(jnp.bfloat16), w2_ref[sl, :],
                          preferred_element_type=jnp.float32)
    z1 = z1 + p_ref[5:6, :]

    # residual re-read from VMEM scratch (no long f32 live range across dots)
    o_ref[...] = (x1_ref[...] + z1).astype(o_ref.dtype)


# ------------------------------ tiling policy -------------------------------

def _vmem_capacity_bytes():
    """Physical per-core VMEM, with a conservative (v7x-safe) fallback."""
    try:
        info = pltpu.get_tpu_info()
        for attr in ("vmem_capacity_bytes", "vmem_bytes", "vmem_size_bytes"):
            v = getattr(info, attr, None)
            if isinstance(v, int) and v > 0:
                return v
    except Exception:
        pass
    return 64 * 1024 * 1024


def _choose_dff_tile(DFF, cap=2048):
    """Largest multiple of 128 dividing DFF, capped (bounds the ReLU chunk)."""
    if DFF <= cap or DFF % 128 != 0:
        return DFF
    best, t = DFF, 128
    while t <= cap:
        if DFF % t == 0:
            best = t
        t += 128
    return best


def _choose_tm(M, tm_cap, want_two_steps):
    """Row tile that DIVIDES M (no pad/slice copies in the common case)."""
    tm_cap = max(8, tm_cap)
    if M % 8 == 0:
        limit = min(tm_cap, M)
        best, t = 8, 8
        while t <= limit:
            if M % t == 0:
                best = t
            t += 8
        if want_two_steps and M // best < 2:       # feed v7x's second TC
            t, alt = 8, None
            while t <= M // 2:
                if M % t == 0:
                    alt = t
                t += 8
            if alt is not None:
                best = alt
        return best, M
    if M <= tm_cap:                                # ragged small M: one block
        return M, M
    # TODO(synk): rare ragged-large-M fallback pays one pad + one slice copy.
    tm = min(tm_cap, 512)
    Mp = ((M + tm - 1) // tm) * tm
    return tm, Mp


# ------------------------------ wrappers -------------------------------------

def prepare_encoder_params(attn_params, ffn_params):
    """One-time parameter packing: bf16 weights + merged (6, D) f32 params."""
    DFF = ffn_params["w1"].shape[1]
    p = jnp.stack([attn_params["a2"], attn_params["b2"], attn_params["b"],
                   ffn_params["a2"], ffn_params["b2"], ffn_params["bias2"]]
                  ).astype(jnp.float32)
    return dict(
        p=p,
        w_attn=attn_params["w"].astype(jnp.bfloat16),
        w1=ffn_params["w1"].astype(jnp.bfloat16),
        b1=ffn_params["bias1"].reshape(1, DFF).astype(jnp.float32),
        w2=ffn_params["w2"].astype(jnp.bfloat16),
    )


def _build_call(Mp, D, DFF, tm, dff_tile, out_dtype, buffered_weights,
                vmem_limit):
    full = lambda i: (0, 0)

    def wspec(shape):
        if buffered_weights:
            return pl.BlockSpec(shape, full, pipeline_mode=pl.Buffered(1))
        return pl.BlockSpec(shape, full)

    grid_spec = pltpu.PrefetchScalarGridSpec(
        num_scalar_prefetch=0,
        grid=(Mp // tm,),
        in_specs=[pl.BlockSpec((tm, D), lambda i: (i, 0)),   # x rows
                  wspec((6, D)),                             # packed LN/bias params
                  wspec((D, D)),                             # attn-linear weight
                  wspec((D, DFF)),                           # ffn w1
                  wspec((1, DFF)),                           # ffn bias1
                  wspec((DFF, D))],                          # ffn w2
        out_specs=pl.BlockSpec((tm, D), lambda i: (i, 0)),
        scratch_shapes=[pltpu.VMEM((tm, D), jnp.float32)],   # sublayer-0 output
    )
    return pl.pallas_call(
        functools.partial(_encoder_layer_kernel, dff_tile=dff_tile),
        out_shape=jax.ShapeDtypeStruct((Mp, D), out_dtype),
        grid_spec=grid_spec,
        compiler_params=pltpu.CompilerParams(
            dimension_semantics=("parallel",),
            vmem_limit_bytes=vmem_limit),
    )


def encoder_layer(x, mask, params):
    """x: (B, S, D) float32 -> (B, S, D). mask accepted for interface parity."""
    del mask  # TODO(synk): only a real attention sublayer would consume the mask.
    B, S, D = x.shape
    M = B * S
    DFF = params["w1"].shape[1]
    x2d = x.reshape(M, D)

    # --- generation-aware VMEM / tiling policy ---
    vmem_cap = _vmem_capacity_bytes()
    if vmem_cap >= 100 * 2**20:            # v5e / v6e: 128 MiB VMEM, single TC
        vmem_limit, want_two, tm_cap = 80 * 2**20, False, 2048
    else:                                  # v7x-like: 64 MiB VMEM, 2 TCs
        vmem_limit, want_two, tm_cap = 48 * 2**20, True, 1024

    dff_tile = _choose_dff_tile(DFF)
    # bf16 weights (assume double-buffered worst case) + small f32 params
    weight_bytes = 2 * 2 * (D * D + 2 * D * DFF) + 4 * (6 * D + DFF)
    # per-row f32 bytes: 2x-in + 2x-out + x1 scratch + LN/z temps + h chunk
    row_bytes = 4 * (9 * D + 2 * dff_tile)
    budget = vmem_limit - weight_bytes - 2 * 2**20
    tm_cap = max(8, min(tm_cap, max(8, (budget // row_bytes)) // 8 * 8))

    tm, Mp = _choose_tm(M, tm_cap, want_two)
    padded = Mp != M
    if padded:  # rare ragged-large-M fallback only (zero rows are sliced off)
        x2d = jnp.pad(x2d, ((0, Mp - M), (0, 0)))

    args = (x2d, params["p"], params["w_attn"], params["w1"],
            params["b1"], params["w2"])

    if _HAS_BUFFERED:
        try:
            out = _build_call(Mp, D, DFF, tm, dff_tile, x.dtype, True,
                              vmem_limit)(*args)
        except Exception:
            # pipeline_mode=pl.Buffered(1) not accepted by this jax/Mosaic build
            out = _build_call(Mp, D, DFF, tm, dff_tile, x.dtype, False,
                              vmem_limit)(*args)
    else:
        out = _build_call(Mp, D, DFF, tm, dff_tile, x.dtype, False,
                          vmem_limit)(*args)

    if padded:
        out = out[:M]
    return out.reshape(B, S, D)


# ------------------------------ reference ------------------------------------

def _layer_norm_ref(x, a2, b2):
    d = x.shape[-1]
    mean = jnp.mean(x, axis=-1, keepdims=True)
    centered = x - mean
    std = jnp.sqrt(jnp.sum(centered * centered, axis=-1, keepdims=True) / (d - 1))
    return a2 * centered / (std + EPS) + b2


def _reference(x, attn_params, ffn_params, matmul_dtype=jnp.float32):
    """Pure-JAX reference mirroring the PyTorch forward pass (eval dropout)."""
    def dot(a, b):
        return jnp.dot(a.astype(matmul_dtype), b.astype(matmul_dtype),
                       preferred_element_type=jnp.float32)

    n0 = _layer_norm_ref(x, attn_params["a2"], attn_params["b2"])
    x = x + dot(n0, attn_params["w"]) + attn_params["b"]

    n1 = _layer_norm_ref(x, ffn_params["a2"], ffn_params["b2"])
    h = jnp.maximum(dot(n1, ffn_params["w1"]) + ffn_params["bias1"], 0.0)
    x = x + dot(h, ffn_params["w2"]) + ffn_params["bias2"]
    return x


# ------------------------------ demo / test ----------------------------------

if __name__ == "__main__":
    B, S, D, DFF = 2, 8, 128, 512   # small demo shapes; size = 128

    key = jax.random.PRNGKey(0)
    kx, kw, kb, k1, k2, kb1, kb2 = jax.random.split(key, 7)

    x = jax.random.normal(kx, (B, S, D), dtype=jnp.float32)
    mask = jnp.ones((B, 1, S, S), dtype=jnp.float32)   # unused by the stand-in

    attn_params = dict(
        a2=jnp.ones((D,), jnp.float32),                 # LayerNorm a_2 init
        b2=jnp.zeros((D,), jnp.float32),                # LayerNorm b_2 init
        w=jax.random.normal(kw, (D, D), jnp.float32) / jnp.sqrt(float(D)),
        b=jax.random.normal(kb, (D,), jnp.float32) * 0.01,
    )
    ffn_params = dict(
        a2=jnp.ones((D,), jnp.float32),
        b2=jnp.zeros((D,), jnp.float32),
        w1=jax.random.normal(k1, (D, DFF), jnp.float32) / jnp.sqrt(float(D)),
        bias1=jax.random.normal(kb1, (DFF,), jnp.float32) * 0.01,
        w2=jax.random.normal(k2, (DFF, D), jnp.float32) / jnp.sqrt(float(DFF)),
        bias2=jax.random.normal(kb2, (D,), jnp.float32) * 0.01,
    )

    # One-time param packing / bf16 weight cast (hoisted out of the forward).
    prepared = prepare_encoder_params(attn_params, ffn_params)

    out = encoder_layer(x, mask, prepared)
    out = jax.block_until_ready(out)
    assert out.shape == (B, S, D)

    # Reference with the same bf16-operand / f32-accumulate precision policy.
    # Tolerances account for bf16 operand rounding and the approximate
    # LayerNorm reciprocal (EUP vrcp, ~2^-12 relative error).
    ref_bf16 = _reference(x, attn_params, ffn_params, matmul_dtype=jnp.bfloat16)
    assert jnp.allclose(out, ref_bf16, atol=3e-2, rtol=3e-2), "mismatch vs bf16 ref"

    # Full-f32 reference (PyTorch semantics); looser tol due to bf16 MXU operands.
    ref_f32 = _reference(x, attn_params, ffn_params, matmul_dtype=jnp.float32)
    assert jnp.allclose(out, ref_f32, atol=8e-2, rtol=8e-2), "mismatch vs f32 ref"

    print("KERNEL_OK")
</pallas_src>

<mosaic_0001>
module attributes {stable_mosaic.version = 11 : i64} {
  func.func @_encoder_layer_kernel(%arg0: i32, %arg1: memref<8x128xf32, #tpu.memory_space<vmem>>, %arg2: memref<6x128xf32, #tpu.memory_space<vmem>>, %arg3: memref<128x128xbf16, #tpu.memory_space<vmem>>, %arg4: memref<128x512xbf16, #tpu.memory_space<vmem>>, %arg5: memref<1x512xf32, #tpu.memory_space<vmem>>, %arg6: memref<512x128xbf16, #tpu.memory_space<vmem>>, %arg7: memref<8x128xf32, #tpu.memory_space<vmem>>, %arg8: memref<8x128xf32, #tpu.memory_space<vmem>>) attributes {dimension_semantics = [#tpu.dimension_semantics<parallel>], iteration_bounds = array<i64: 2>, scalar_prefetch = 0 : i64, scratch_operands = 1 : i64, tpu.core_type = #tpu.core_type<tc>, window_params = [{transform_indices = @transform_0, window_bounds = array<i64: 8, 128>}, {pipeline_mode = #tpu.pipeline_mode<synchronous>, transform_indices = @transform_1, window_bounds = array<i64: 6, 128>}, {pipeline_mode = #tpu.pipeline_mode<synchronous>, transform_indices = @transform_2, window_bounds = array<i64: 128, 128>}, {pipeline_mode = #tpu.pipeline_mode<synchronous>, transform_indices = @transform_3, window_bounds = array<i64: 128, 512>}, {pipeline_mode = #tpu.pipeline_mode<synchronous>, transform_indices = @transform_4, window_bounds = array<i64: 1, 512>}, {pipeline_mode = #tpu.pipeline_mode<synchronous>, transform_indices = @transform_5, window_bounds = array<i64: 512, 128>}, {transform_indices = @transform_6, window_bounds = array<i64: 8, 128>}]} {
    %c0 = arith.constant 0 : index
    %c0_0 = arith.constant 0 : index
    %0 = vector.load %arg1[%c0, %c0_0] : memref<8x128xf32, #tpu.memory_space<vmem>>, vector<8x128xf32>
    %c0_1 = arith.constant 0 : index
    %c0_2 = arith.constant 0 : index
    %1 = vector.load %arg2[%c0_1, %c0_2] : memref<6x128xf32, #tpu.memory_space<vmem>>, vector<1x128xf32>
    %c1 = arith.constant 1 : index
    %c0_3 = arith.constant 0 : index
    %2 = vector.load %arg2[%c1, %c0_3] : memref<6x128xf32, #tpu.memory_space<vmem>>, vector<1x128xf32>
    %cst = arith.constant dense<0.000000e+00> : vector<8xf32>
    %3 = vector.multi_reduction <add>, %0, %cst [1] : vector<8x128xf32> to vector<8xf32>
    %4 = vector.shape_cast %3 : vector<8xf32> to vector<8x1xf32>
    %cst_4 = arith.constant 1.280000e+02 : f32
    %5 = vector.broadcast %cst_4 : f32 to vector<8x1xf32>
    %6 = arith.divf %4, %5 : vector<8x1xf32>
    %7 = vector.broadcast %6 : vector<8x1xf32> to vector<8x128xf32>
    %8 = arith.subf %0, %7 : vector<8x128xf32>
    %9 = arith.mulf %8, %8 : vector<8x128xf32>
    %cst_5 = arith.constant dense<0.000000e+00> : vector<8xf32>
    %10 = vector.multi_reduction <add>, %9, %cst_5 [1] : vector<8x128xf32> to vector<8xf32>
    %11 = vector.shape_cast %10 : vector<8xf32> to vector<8x1xf32>
    %cst_6 = arith.constant 1.270000e+02 : f32
    %12 = vector.broadcast %cst_6 : f32 to vector<8x1xf32>
    %13 = arith.divf %11, %12 : vector<8x1xf32>
    %14 = math.sqrt %13 : vector<8x1xf32>
    %cst_7 = arith.constant 9.99999997E-7 : f32
    %15 = vector.broadcast %cst_7 : f32 to vector<8x1xf32>
    %16 = arith.addf %14, %15 : vector<8x1xf32>
    %17 = tpu.reciprocal %16 {approx = true} : vector<8x1xf32> -> vector<8x1xf32>
    %18 = vector.broadcast %17 : vector<8x1xf32> to vector<8x128xf32>
    %19 = arith.mulf %8, %18 : vector<8x128xf32>
    %20 = vector.broadcast %1 : vector<1x128xf32> to vector<8x128xf32>
    %21 = arith.mulf %19, %20 : vector<8x128xf32>
    %22 = vector.broadcast %2 : vector<1x128xf32> to vector<8x128xf32>
    %23 = arith.addf %21, %22 : vector<8x128xf32>
    %24 = arith.truncf %23 : vector<8x128xf32> to vector<8x128xbf16>
    %c0_8 = arith.constant 0 : index
    %c0_9 = arith.constant 0 : index
    %25 = vector.load %arg3[%c0_8, %c0_9] : memref<128x128xbf16, #tpu.memory_space<vmem>>, vector<128x128xbf16>
    %cst_10 = arith.constant dense<0.000000e+00> : vector<8x128xf32>
    %26 = tpu.matmul %24, %25, %cst_10 {dimension_numbers = #tpu.dot_dimension_numbers<[1], [0], [0], [1], [0, 0, 1, 1], [], []>} : vector<8x128xbf16>, vector<128x128xbf16>, vector<8x128xf32> -> vector<8x128xf32>
    %c2 = arith.constant 2 : index
    %c0_11 = arith.constant 0 : index
    %27 = vector.load %arg2[%c2, %c0_11] : memref<6x128xf32, #tpu.memory_space<vmem>>, vector<1x128xf32>
    %28 = vector.broadcast %27 : vector<1x128xf32> to vector<8x128xf32>
    %29 = arith.addf %26, %28 : vector<8x128xf32>
    %c0_12 = arith.constant 0 : index
    %c0_13 = arith.constant 0 : index
    %30 = vector.load %arg1[%c0_12, %c0_13] : memref<8x128xf32, #tpu.memory_space<vmem>>, vector<8x128xf32>
    %31 = arith.addf %30, %29 : vector<8x128xf32>
    %c0_14 = arith.constant 0 : index
    %c0_15 = arith.constant 0 : index
    %32 = vector.load %arg8[%c0_14, %c0_15] : memref<8x128xf32, #tpu.memory_space<vmem>>, vector<8x128xf32>
    tpu.vector_store %arg8[%c0_14, %c0_15], %31 {strides = array<i32>} : memref<8x128xf32, #tpu.memory_space<vmem>>, vector<8x128xf32>,
    %c0_16 = arith.constant 0 : index
    %c0_17 = arith.constant 0 : index
    %33 = vector.load %arg8[%c0_16, %c0_17] : memref<8x128xf32, #tpu.memory_space<vmem>>, vector<8x128xf32>
    %c3 = arith.constant 3 : index
    %c0_18 = arith.constant 0 : index
    %34 = vector.load %arg2[%c3, %c0_18] : memref<6x128xf32, #tpu.memory_space<vmem>>, vector<1x128xf32>
    %c4 = arith.constant 4 : index
    %c0_19 = arith.constant 0 : index
    %35 = vector.load %arg2[%c4, %c0_19] : memref<6x128xf32, #tpu.memory_space<vmem>>, vector<1x128xf32>
    %cst_20 = arith.constant dense<0.000000e+00> : vector<8xf32>
    %36 = vector.multi_reduction <add>, %33, %cst_20 [1] : vector<8x128xf32> to vector<8xf32>
    %37 = vector.shape_cast %36 : vector<8xf32> to vector<8x1xf32>
    %cst_21 = arith.constant 1.280000e+02 : f32
    %38 = vector.broadcast %cst_21 : f32 to vector<8x1xf32>
    %39 = arith.divf %37, %38 : vector<8x1xf32>
    %40 = vector.broadcast %39 : vector<8x1xf32> to vector<8x128xf32>
    %41 = arith.subf %33, %40 : vector<8x128xf32>
    %42 = arith.mulf %41, %41 : vector<8x128xf32>
    %cst_22 = arith.constant dense<0.000000e+00> : vector<8xf32>
    %43 = vector.multi_reduction <add>, %42, %cst_22 [1] : vector<8x128xf32> to vector<8xf32>
    %44 = vector.shape_cast %43 : vector<8xf32> to vector<8x1xf32>
    %cst_23 = arith.constant 1.270000e+02 : f32
    %45 = vector.broadcast %cst_23 : f32 to vector<8x1xf32>
    %46 = arith.divf %44, %45 : vector<8x1xf32>
    %47 = math.sqrt %46 : vector<8x1xf32>
    %cst_24 = arith.constant 9.99999997E-7 : f32
    %48 = vector.broadcast %cst_24 : f32 to vector<8x1xf32>
    %49 = arith.addf %47, %48 : vector<8x1xf32>
    %50 = tpu.reciprocal %49 {approx = true} : vector<8x1xf32> -> vector<8x1xf32>
    %51 = vector.broadcast %50 : vector<8x1xf32> to vector<8x128xf32>
    %52 = arith.mulf %41, %51 : vector<8x128xf32>
    %53 = vector.broadcast %34 : vector<1x128xf32> to vector<8x128xf32>
    %54 = arith.mulf %52, %53 : vector<8x128xf32>
    %55 = vector.broadcast %35 : vector<1x128xf32> to vector<8x128xf32>
    %56 = arith.addf %54, %55 : vector<8x128xf32>
    %57 = arith.truncf %56 : vector<8x128xf32> to vector<8x128xbf16>
    %cst_25 = arith.constant 0.000000e+00 : f32
    %58 = vector.broadcast %cst_25 : f32 to vector<8x128xf32>
    %c0_26 = arith.constant 0 : index
    %c0_27 = arith.constant 0 : index
    %59 = vector.load %arg4[%c0_26, %c0_27] : memref<128x512xbf16, #tpu.memory_space<vmem>>, vector<128x512xbf16>
    %cst_28 = arith.constant dense<0.000000e+00> : vector<8x512xf32>
    %60 = tpu.matmul %57, %59, %cst_28 {dimension_numbers = #tpu.dot_dimension_numbers<[1], [0], [0], [1], [0, 0, 1, 1], [], []>} : vector<8x128xbf16>, vector<128x512xbf16>, vector<8x512xf32> -> vector<8x512xf32>
    %c0_29 = arith.constant 0 : index
    %c0_30 = arith.constant 0 : index
    %61 = vector.load %arg5[%c0_29, %c0_30] : memref<1x512xf32, #tpu.memory_space<vmem>>, vector<1x512xf32>
    %62 = vector.broadcast %61 : vector<1x512xf32> to vector<8x512xf32>
    %63 = arith.addf %60, %62 : vector<8x512xf32>
    %cst_31 = arith.constant 0.000000e+00 : f32
    %64 = vector.broadcast %cst_31 : f32 to vector<8x512xf32>
    %65 = arith.maximumf %63, %64 : vector<8x512xf32>
    %66 = arith.truncf %65 : vector<8x512xf32> to vector<8x512xbf16>
    %c0_32 = arith.constant 0 : index
    %c0_33 = arith.constant 0 : index
    %67 = vector.load %arg6[%c0_32, %c0_33] : memref<512x128xbf16, #tpu.memory_space<vmem>>, vector<512x128xbf16>
    %cst_34 = arith.constant dense<0.000000e+00> : vector<8x128xf32>
    %68 = tpu.matmul %66, %67, %cst_34 {dimension_numbers = #tpu.dot_dimension_numbers<[1], [0], [0], [1], [0, 0, 1, 1], [], []>} : vector<8x512xbf16>, vector<512x128xbf16>, vector<8x128xf32> -> vector<8x128xf32>
    %69 = arith.addf %58, %68 : vector<8x128xf32>
    %c5 = arith.constant 5 : index
    %c0_35 = arith.constant 0 : index
    %70 = vector.load %arg2[%c5, %c0_35] : memref<6x128xf32, #tpu.memory_space<vmem>>, vector<1x128xf32>
    %71 = vector.broadcast %70 : vector<1x128xf32> to vector<8x128xf32>
    %72 = arith.addf %69, %71 : vector<8x128xf32>
    %c0_36 = arith.constant 0 : index
    %c0_37 = arith.constant 0 : index
    %73 = vector.load %arg8[%c0_36, %c0_37] : memref<8x128xf32, #tpu.memory_space<vmem>>, vector<8x128xf32>
    %74 = arith.addf %73, %72 : vector<8x128xf32>
    %c0_38 = arith.constant 0 : index
    %c0_39 = arith.constant 0 : index
    %75 = vector.load %arg7[%c0_38, %c0_39] : memref<8x128xf32, #tpu.memory_space<vmem>>, vector<8x128xf32>
    tpu.vector_store %arg7[%c0_38, %c0_39], %74 {strides = array<i32>} : memref<8x128xf32, #tpu.memory_space<vmem>>, vector<8x128xf32>,
    return
  }
  func.func @transform_0(%arg0: i32) -> (i32, i32) {
    %c0_i32 = arith.constant 0 : i32
    %c0_i32_0 = arith.constant 0 : i32
    return %arg0, %c0_i32 : i32, i32
  }
  func.func @transform_1(%arg0: i32) -> (i32, i32) {
    %c0_i32 = arith.constant 0 : i32
    %c0_i32_0 = arith.constant 0 : i32
    %c0_i32_1 = arith.constant 0 : i32
    return %c0_i32, %c0_i32_0 : i32, i32
  }
  func.func @transform_2(%arg0: i32) -> (i32, i32) {
    %c0_i32 = arith.constant 0 : i32
    %c0_i32_0 = arith.constant 0 : i32
    %c0_i32_1 = arith.constant 0 : i32
    return %c0_i32, %c0_i32_0 : i32, i32
  }
  func.func @transform_3(%arg0: i32) -> (i32, i32) {
    %c0_i32 = arith.constant 0 : i32
    %c0_i32_0 = arith.constant 0 : i32
    %c0_i32_1 = arith.constant 0 : i32
    return %c0_i32, %c0_i32_0 : i32, i32
  }
  func.func @transform_4(%arg0: i32) -> (i32, i32) {
    %c0_i32 = arith.constant 0 : i32
    %c0_i32_0 = arith.constant 0 : i32
    %c0_i32_1 = arith.constant 0 : i32
    return %c0_i32, %c0_i32_0 : i32, i32
  }
  func.func @transform_5(%arg0: i32) -> (i32, i32) {
    %c0_i32 = arith.constant 0 : i32
    %c0_i32_0 = arith.constant 0 : i32
    %c0_i32_1 = arith.constant 0 : i32
    return %c0_i32, %c0_i32_0 : i32, i32
  }
  func.func @transform_6(%arg0: i32) -> (i32, i32) {
    %c0_i32 = arith.constant 0 : i32
    %c0_i32_0 = arith.constant 0 : i32
    return %arg0, %c0_i32 : i32, i32
  }
}

module attributes {stable_mosaic.version = 11 : i64} {
  func.func @_encoder_layer_kernel(%arg0: i32, %arg1: memref<8x128xf32, #tpu.memory_space<vmem>>, %arg2: memref<6x128xf32, #tpu.memory_space<vmem>>, %arg3: memref<128x128xbf16, #tpu.memory_space<vmem>>, %arg4: memref<128x512xbf16, #tpu.memory_space<vmem>>, %arg5: memref<1x512xf32, #tpu.memory_space<vmem>>, %arg6: memref<512x128xbf16, #tpu.memory_space<vmem>>, %arg7: memref<8x128xf32, #tpu.memory_space<vmem>>, %arg8: memref<8x128xf32, #tpu.memory_space<vmem>>) attributes {dimension_semantics = [#tpu.dimension_semantics<parallel>], iteration_bounds = array<i64: 2>, scalar_prefetch = 0 : i64, scratch_operands = 1 : i64, tpu.core_type = #tpu.core_type<tc>, window_params = [{transform_indices = @transform_0, window_bounds = array<i64: 8, 128>}, {pipeline_mode = #tpu.pipeline_mode<synchronous>, transform_indices = @transform_1, window_bounds = array<i64: 6, 128>}, {pipeline_mode = #tpu.pipeline_mode<synchronous>, transform_indices = @transform_2, window_bounds = array<i64: 128, 128>}, {pipeline_mode = #tpu.pipeline_mode<synchronous>, transform_indices = @transform_3, window_bounds = array<i64: 128, 512>}, {pipeline_mode = #tpu.pipeline_mode<synchronous>, transform_indices = @transform_4, window_bounds = array<i64: 1, 512>}, {pipeline_mode = #tpu.pipeline_mode<synchronous>, transform_indices = @transform_5, window_bounds = array<i64: 512, 128>}, {transform_indices = @transform_6, window_bounds = array<i64: 8, 128>}]} {
    %c0 = arith.constant 0 : index
    %c0_0 = arith.constant 0 : index
    %0 = vector.load %arg1[%c0, %c0_0] : memref<8x128xf32, #tpu.memory_space<vmem>>, vector<8x128xf32>
    %c0_1 = arith.constant 0 : index
    %c0_2 = arith.constant 0 : index
    %1 = vector.load %arg2[%c0_1, %c0_2] : memref<6x128xf32, #tpu.memory_space<vmem>>, vector<1x128xf32>
    %c1 = arith.constant 1 : index
    %c0_3 = arith.constant 0 : index
    %2 = vector.load %arg2[%c1, %c0_3] : memref<6x128xf32, #tpu.memory_space<vmem>>, vector<1x128xf32>
    %cst = arith.constant dense<0.000000e+00> : vector<8xf32>
    %3 = vector.multi_reduction <add>, %0, %cst [1] : vector<8x128xf32> to vector<8xf32>
    %4 = vector.shape_cast %3 : vector<8xf32> to vector<8x1xf32>
    %cst_4 = arith.constant 1.280000e+02 : f32
    %5 = vector.broadcast %cst_4 : f32 to vector<8x1xf32>
    %6 = arith.divf %4, %5 : vector<8x1xf32>
    %7 = vector.broadcast %6 : vector<8x1xf32> to vector<8x128xf32>
    %8 = arith.subf %0, %7 : vector<8x128xf32>
    %9 = arith.mulf %8, %8 : vector<8x128xf32>
    %cst_5 = arith.constant dense<0.000000e+00> : vector<8xf32>
    %10 = vector.multi_reduction <add>, %9, %cst_5 [1] : vector<8x128xf32> to vector<8xf32>
    %11 = vector.shape_cast %10 : vector<8xf32> to vector<8x1xf32>
    %cst_6 = arith.constant 1.270000e+02 : f32
    %12 = vector.broadcast %cst_6 : f32 to vector<8x1xf32>
    %13 = arith.divf %11, %12 : vector<8x1xf32>
    %14 = math.sqrt %13 : vector<8x1xf32>
    %cst_7 = arith.constant 9.99999997E-7 : f32
    %15 = vector.broadcast %cst_7 : f32 to vector<8x1xf32>
    %16 = arith.addf %14, %15 : vector<8x1xf32>
    %17 = tpu.reciprocal %16 {approx = true} : vector<8x1xf32> -> vector<8x1xf32>
    %18 = vector.broadcast %17 : vector<8x1xf32> to vector<8x128xf32>
    %19 = arith.mulf %8, %18 : vector<8x128xf32>
    %20 = vector.broadcast %1 : vector<1x128xf32> to vector<8x128xf32>
    %21 = arith.mulf %19, %20 : vector<8x128xf32>
    %22 = vector.broadcast %2 : vector<1x128xf32> to vector<8x128xf32>
    %23 = arith.addf %21, %22 : vector<8x128xf32>
    %24 = arith.truncf %23 : vector<8x128xf32> to vector<8x128xbf16>
    %c0_8 = arith.constant 0 : index
    %c0_9 = arith.constant 0 : index
    %25 = vector.load %arg3[%c0_8, %c0_9] : memref<128x128xbf16, #tpu.memory_space<vmem>>, vector<128x128xbf16>
    %cst_10 = arith.constant dense<0.000000e+00> : vector<8x128xf32>
    %26 = tpu.matmul %24, %25, %cst_10 {dimension_numbers = #tpu.dot_dimension_numbers<[1], [0], [0], [1], [0, 0, 1, 1], [], []>} : vector<8x128xbf16>, vector<128x128xbf16>, vector<8x128xf32> -> vector<8x128xf32>
    %c2 = arith.constant 2 : index
    %c0_11 = arith.constant 0 : index
    %27 = vector.load %arg2[%c2, %c0_11] : memref<6x128xf32, #tpu.memory_space<vmem>>, vector<1x128xf32>
    %28 = vector.broadcast %27 : vector<1x128xf32> to vector<8x128xf32>
    %29 = arith.addf %26, %28 : vector<8x128xf32>
    %c0_12 = arith.constant 0 : index
    %c0_13 = arith.constant 0 : index
    %30 = vector.load %arg1[%c0_12, %c0_13] : memref<8x128xf32, #tpu.memory_space<vmem>>, vector<8x128xf32>
    %31 = arith.addf %30, %29 : vector<8x128xf32>
    %c0_14 = arith.constant 0 : index
    %c0_15 = arith.constant 0 : index
    %32 = vector.load %arg8[%c0_14, %c0_15] : memref<8x128xf32, #tpu.memory_space<vmem>>, vector<8x128xf32>
    tpu.vector_store %arg8[%c0_14, %c0_15], %31 {strides = array<i32>} : memref<8x128xf32, #tpu.memory_space<vmem>>, vector<8x128xf32>,
    %c0_16 = arith.constant 0 : index
    %c0_17 = arith.constant 0 : index
    %33 = vector.load %arg8[%c0_16, %c0_17] : memref<8x128xf32, #tpu.memory_space<vmem>>, vector<8x128xf32>
    %c3 = arith.constant 3 : index
    %c0_18 = arith.constant 0 : index
    %34 = vector.load %arg2[%c3, %c0_18] : memref<6x128xf32, #tpu.memory_space<vmem>>, vector<1x128xf32>
    %c4 = arith.constant 4 : index
    %c0_19 = arith.constant 0 : index
    %35 = vector.load %arg2[%c4, %c0_19] : memref<6x128xf32, #tpu.memory_space<vmem>>, vector<1x128xf32>
    %cst_20 = arith.constant dense<0.000000e+00> : vector<8xf32>
    %36 = vector.multi_reduction <add>, %33, %cst_20 [1] : vector<8x128xf32> to vector<8xf32>
    %37 = vector.shape_cast %36 : vector<8xf32> to vector<8x1xf32>
    %cst_21 = arith.constant 1.280000e+02 : f32
    %38 = vector.broadcast %cst_21 : f32 to vector<8x1xf32>
    %39 = arith.divf %37, %38 : vector<8x1xf32>
    %40 = vector.broadcast %39 : vector<8x1xf32> to vector<8x128xf32>
    %41 = arith.subf %33, %40 : vector<8x128xf32>
    %42 = arith.mulf %41, %41 : vector<8x128xf32>
    %cst_22 = arith.constant dense<0.000000e+00> : vector<8xf32>
    %43 = vector.multi_reduction <add>, %42, %cst_22 [1] : vector<8x128xf32> to vector<8xf32>
    %44 = vector.shape_cast %43 : vector<8xf32> to vector<8x1xf32>
    %cst_23 = arith.constant 1.270000e+02 : f32
    %45 = vector.broadcast %cst_23 : f32 to vector<8x1xf32>
    %46 = arith.divf %44, %45 : vector<8x1xf32>
    %47 = math.sqrt %46 : vector<8x1xf32>
    %cst_24 = arith.constant 9.99999997E-7 : f32
    %48 = vector.broadcast %cst_24 : f32 to vector<8x1xf32>
    %49 = arith.addf %47, %48 : vector<8x1xf32>
    %50 = tpu.reciprocal %49 {approx = true} : vector<8x1xf32> -> vector<8x1xf32>
    %51 = vector.broadcast %50 : vector<8x1xf32> to vector<8x128xf32>
    %52 = arith.mulf %41, %51 : vector<8x128xf32>
    %53 = vector.broadcast %34 : vector<1x128xf32> to vector<8x128xf32>
    %54 = arith.mulf %52, %53 : vector<8x128xf32>
    %55 = vector.broadcast %35 : vector<1x128xf32> to vector<8x128xf32>
    %56 = arith.addf %54, %55 : vector<8x128xf32>
    %57 = arith.truncf %56 : vector<8x128xf32> to vector<8x128xbf16>
    %cst_25 = arith.constant 0.000000e+00 : f32
    %58 = vector.broadcast %cst_25 : f32 to vector<8x128xf32>
    %c0_26 = arith.constant 0 : index
    %c0_27 = arith.constant 0 : index
    %59 = vector.load %arg4[%c0_26, %c0_27] : memref<128x512xbf16, #tpu.memory_space<vmem>>, vector<128x512xbf16>
    %cst_28 = arith.constant dense<0.000000e+00> : vector<8x512xf32>
    %60 = tpu.matmul %57, %59, %cst_28 {dimension_numbers = #tpu.dot_dimension_numbers<[1], [0], [0], [1], [0, 0, 1, 1], [], []>} : vector<8x128xbf16>, vector<128x512xbf16>, vector<8x512xf32> -> vector<8x512xf32>
    %c0_29 = arith.constant 0 : index
    %c0_30 = arith.constant 0 : index
    %61 = vector.load %arg5[%c0_29, %c0_30] : memref<1x512xf32, #tpu.memory_space<vmem>>, vector<1x512xf32>
    %62 = vector.broadcast %61 : vector<1x512xf32> to vector<8x512xf32>
    %63 = arith.addf %60, %62 : vector<8x512xf32>
    %cst_31 = arith.constant 0.000000e+00 : f32
    %64 = vector.broadcast %cst_31 : f32 to vector<8x512xf32>
    %65 = arith.maximumf %63, %64 : vector<8x512xf32>
    %66 = arith.truncf %65 : vector<8x512xf32> to vector<8x512xbf16>
    %c0_32 = arith.constant 0 : index
    %c0_33 = arith.constant 0 : index
    %67 = vector.load %arg6[%c0_32, %c0_33] : memref<512x128xbf16, #tpu.memory_space<vmem>>, vector<512x128xbf16>
    %cst_34 = arith.constant dense<0.000000e+00> : vector<8x128xf32>
    %68 = tpu.matmul %66, %67, %cst_34 {dimension_numbers = #tpu.dot_dimension_numbers<[1], [0], [0], [1], [0, 0, 1, 1], [], []>} : vector<8x512xbf16>, vector<512x128xbf16>, vector<8x128xf32> -> vector<8x128xf32>
    %69 = arith.addf %58, %68 : vector<8x128xf32>
    %c5 = arith.constant 5 : index
    %c0_35 = arith.constant 0 : index
    %70 = vector.load %arg2[%c5, %c0_35] : memref<6x128xf32, #tpu.memory_space<vmem>>, vector<1x128xf32>
    %71 = vector.broadcast %70 : vector<1x128xf32> to vector<8x128xf32>
    %72 = arith.addf %69, %71 : vector<8x128xf32>
    %c0_36 = arith.constant 0 : index
    %c0_37 = arith.constant 0 : index
    %73 = vector.load %arg8[%c0_36, %c0_37] : memref<8x128xf32, #tpu.memory_space<vmem>>, vector<8x128xf32>
    %74 = arith.addf %73, %72 : vector<8x128xf32>
    %c0_38 = arith.constant 0 : index
    %c0_39 = arith.constant 0 : index
    %75 = vector.load %arg7[%c0_38, %c0_39] : memref<8x128xf32, #tpu.memory_space<vmem>>, vector<8x128xf32>
    tpu.vector_store %arg7[%c0_38, %c0_39], %74 {strides = array<i32>} : memref<8x128xf32, #tpu.memory_space<vmem>>, vector<8x128xf32>,
    return
  }
  func.func @transform_0(%arg0: i32) -> (i32, i32) {
    %c0_i32 = arith.constant 0 : i32
    %c0_i32_0 = arith.constant 0 : i32
    return %arg0, %c0_i32 : i32, i32
  }
  func.func @transform_1(%arg0: i32) -> (i32, i32) {
    %c0_i32 = arith.constant 0 : i32
    %c0_i32_0 = arith.constant 0 : i32
    %c0_i32_1 = arith.constant 0 : i32
    return %c0_i32, %c0_i32_0 : i32, i32
  }
  func.func @transform_2(%arg0: i32) -> (i32, i32) {
    %c0_i32 = arith.constant 0 : i32
    %c0_i32_0 = arith.constant 0 : i32
    %c0_i32_1 = arith.constant 0 : i32
    return %c0_i32, %c0_i32_0 : i32, i32
  }
  func.func @transform_3(%arg0: i32) -> (i32, i32) {
    %c0_i32 = arith.constant 0 : i32
    %c0_i32_0 = arith.constant 0 : i32
    %c0_i32_1 = arith.constant 0 : i32
    return %c0_i32, %c0_i32_0 : i32, i32
  }
  func.func @transform_4(%arg0: i32) -> (i32, i32) {
    %c0_i32 = arith.constant 0 : i32
    %c0_i32_0 = arith.constant 0 : i32
    %c0_i32_1 = arith.constant 0 : i32
    return %c0_i32, %c0_i32_0 : i32, i32
  }
  func.func @transform_5(%arg0: i32) -> (i32, i32) {
    %c0_i32 = arith.constant 0 : i32
    %c0_i32_0 = arith.constant 0 : i32
    %c0_i32_1 = arith.constant 0 : i32
    return %c0_i32, %c0_i32_0 : i32, i32
  }
  func.func @transform_6(%arg0: i32) -> (i32, i32) {
    %c0_i32 = arith.constant 0 : i32
    %c0_i32_0 = arith.constant 0 : i32
    return %arg0, %c0_i32 : i32, i32
  }
}

</mosaic_0001>

<bundles_post_ra>
// kernel: tpu_custom_call.1
= control target key start
LH: loop header
LB: loop body
LE: loop exit
PB: predicated region body
PF: predicated region fallthrough
CT: control target
= control target key end

     0   :  { %11 = vsyncpa [#allocation4], 0  ;;  %s2219_s0 = inlined_call_operand.hbm [shape: f32[16,128], index: 0, kind: input, shape index: {}]   ;;  %s2220_s1 = inlined_call_operand.hbm [shape: f32[6,128], index: 1, kind: input, shape index: {}]   ;;  %s2221_s2 = inlined_call_operand.hbm [shape: bf16[128,128], index: 2, kind: input, shape index: {}]   ;;  %s2222_s3 = inlined_call_operand.hbm [shape: bf16[128,512], index: 3, kind: input, shape index: {}]   ;;  %s2223_s4 = inlined_call_operand.hbm [shape: f32[1,512], index: 4, kind: input, shape index: {}]   ;;  %s2224_s5 = inlined_call_operand.hbm [shape: bf16[512,128], index: 5, kind: input, shape index: {}]   ;;  %s2225_s6 = inlined_call_operand.hbm [shape: f32[16,128], index: 6, kind: output, shape index: {}]  }
   0x1   :  { %13 = vsyncpa [#allocation4 + $0x1], 0 }
   0x2   :  { %14 = vsyncpa [#allocation7], 0 }
   0x3   :  { %15 = vsyncpa [#allocation10], 0 }
   0x4   :  { %16 = vsyncpa [#allocation13], 0 }
   0x5   :  { %17 = vsyncpa [#allocation5], 0 }
   0x6   :  { %19 = vsyncpa [#allocation5 + $0x1], 0  ;;  %s2022_s21 = smov 0   ;;  %s2024_s22 = smov 0  }
   0x7   :  { %s2026_s23 = smov 0   ;;  %s2028_s24 = smov 0  }
   0x8 LB: > { %s199_s27 = sshll.u32 %s2220_s1, 4  ;;  %s2046_s28 = sadd.s32 4294967295, %s1974_s24   ;;  %s1974_s24 = sphi %s2028_s24, %s2236_s24   ;;  %s1970_s23 = sphi %s2026_s23, %s2235_s23   ;;  %s1966_s22 = sphi %s2024_s22, %s2234_s22   ;;  %s1962_s21 = sphi %s2022_s21, %s2233_s21   ;;  %s200_s27 = int_to_ptr.hbm [resolvable:$true] %s199_s27 }
   0x9   : > { %p1214_p0 = scmp.ge.s32.totalorder %s1974_s24, 1  ;;  %p46_p1 = scmp.eq.s32.totalorder %s2046_s28, 0 }
   0xa   : > { %p187_p2 = scmp.lt.s32.totalorder %s1974_s24, 3  ;;  %s1976_s30 = smov [#allocation6]  }
   0xb   : > { %s201_s7 = sshll.u32 %s1976_s30, 4  ;;  %s224_s10 = sshll.u32 %s2222_s3, 4  ;;  %s202_s7 = int_to_ptr.vmem [resolvable:$true] %s201_s7  ;;  %s225_s10 = int_to_ptr.hbm [resolvable:$true] %s224_s10 }
   0xc   : > { %p2051_p3 = pnand %p1214_p0, %p187_p2  ;;  %s1977_s12 = smov [#allocation9]  }
   0xd   : > { %s226_s13 = sshll.u32 %s1977_s12, 4  ;;  %s1978_s14 = smov 256   ;;  %s227_s13 = int_to_ptr.vmem [resolvable:$true] %s226_s13 }
   0xe   : > { %p1619_p5 = pneg %p2051_p3  ;;  %s1979_s15 = smov 16  }
   0xf   : > { %s210_s18 = sshll.u32 %s2221_s2, 4  ;;  %s1980_s19 = smov [#allocation8]   ;;  %s211_s18 = int_to_ptr.hbm [resolvable:$true] %s210_s18 }
  0x10   : > { %p2063_p6 = pnand %p1619_p5, %p46_p1  ;;  %s212_s20 = sshll.u32 %s1980_s19, 4  ;;  %s213_s20 = int_to_ptr.vmem [resolvable:$true] %s212_s20 }
  0x11   : > { %s239_s30 = sshll.u32 %s2223_s4, 4  ;;  %s1983_s8 = smov [#allocation11]   ;;  %s240_s30 = int_to_ptr.hbm [resolvable:$true] %s239_s30 }
  0x12   : > { %1622 = dma.hbm_to_vmem [thread:$0]  (!%p2063_p6), %s200_s27, 128, %s202_s7, [#allocation7]  }
  0x13   : > { %1628 = dma.hbm_to_vmem [thread:$0]  (!%p2063_p6), %s225_s10, 4096, %s227_s13, [#allocation10], %s1978_s14, %s1978_s14, %s1979_s15  }
  0x14   : > { %s1981_s27 = smov 64   ;;  %s1982_s7 = smov 4  }
  0x15   : > { %1625 = dma.hbm_to_vmem [thread:$0]  (!%p2063_p6), %s211_s18, 1024, %s213_s20, [#allocation7], %s1981_s27, %s1981_s27, %s1982_s7  }
  0x16   : > { %s241_s9 = sshll.u32 %s1983_s8, 4  ;;  %s250_s13 = sshll.u32 %s2224_s5, 4  ;;  %s242_s9 = int_to_ptr.vmem [resolvable:$true] %s241_s9  ;;  %s251_s13 = int_to_ptr.hbm [resolvable:$true] %s250_s13 }
  0x17   : > { %1631 = dma.hbm_to_vmem [thread:$0]  (!%p2063_p6), %s240_s30, 64, %s242_s9, [#allocation10]  }
  0x18   : > { %s1984_s14 = smov [#allocation12]   ;;  %s1213_s16 = sadd.s32 4294967294, %s1974_s24  }
  0x19   : > { %s252_s15 = sshll.u32 %s1984_s14, 4  ;;  %s2088_s17 = sadd.s32 1, %s1974_s24   ;;  %s253_s15 = int_to_ptr.vmem [resolvable:$true] %s252_s15 }
  0x1a   : > { %1634 = dma.hbm_to_vmem [thread:$0]  (!%p2063_p6), %s251_s13, 4096, %s253_s15, [#allocation13], %s1981_s27, %s1981_s27, %s1982_s7  }
  0x1b   : > { %s32_s18 = sadd.s32 1, %s1970_s23  ;;  %s29_s19 = ssub.s32 %s1974_s24, %s2088_s17 }
  0x1c   : > { %p39_p7 = scmp.ne.s32.totalorder %s1970_s23, %s1966_s22  ;;  %p30_p8 = scmp.eq.s32.totalorder %s29_s19, 0 }
  0x1d   : > { %p40_p9 = scmp.eq.s32.totalorder %s1974_s24, 0  ;;  %p45_p10 = scmp.ne.s32.totalorder %s1966_s22, %s1962_s21 }
  0x1e   : > { %p174_p11 = scmp.eq.s32.totalorder %s2046_s28, 1  ;;  %p180_p0 = scmp.eq.s32.totalorder %s1213_s16, 1 }
  0x1f   : > { %s2100_s20 = scalar_select %p30_p8, %s1970_s23, %s32_s18  }
  0x20   : > { %p2104_p12 = por %p46_p1, %p45_p10  ;;  %p2108_p13 = por %p174_p11, %p39_p7 }
  0x21   : > { %p41_p2 = por %p40_p9, %p39_p7  ;;  %s266_s26 = sand.u32 1, %s1970_s23  }
  0x22   : > { %p2113_p5 = por %p180_p0, %p45_p10  ;;  %p1648_p6 = scmp.lt.s32.totalorder %s1974_s24, 2 }
  0x23   : > { %s1221_s27 = sshll.u32 %s266_s26, 3  ;;  %s1222_s7 = sshll.u32 %s1974_s24, 3 }
  0x24   : > { %s274_s10 = scalar_lea.hbm %s2219_s0, %s1222_s7  ;;  %s270_s13 = scalar_lea.vmem [#allocation3], %s1221_s27 }
  0x25   : > { %s276_s12 = sshll.u32 %s274_s10, 4  ;;  %s278_s14 = sshll.u32 %s270_s13, 4  ;;  %s277_s12 = int_to_ptr.hbm [resolvable:$true] %s276_s12  ;;  %s279_s14 = int_to_ptr.vmem [resolvable:$true] %s278_s14 }
  0x26   : > { %p2122_p8 = pnand %p1648_p6, %p41_p2  ;;  %s267_s16 = scalar_lea.sflag [#allocation4], %s266_s26 }
  0x27   : > { %s1866_s18 = sshra.s32 %s277_s12, 4  ;;  %s1873_s27 = scalar_lea.hbm %s2219_s0, 16  ;;  %s1867_s18 = int_to_ptr.hbm [resolvable:$true] %s1866_s18 }
  0x28   : > { %s1868_s19 = scalar_lea.hbm %s1867_s18, 8  ;;  %p1870_p9 = pneg %p2122_p8 }
  0x29   : > { %p1869_p7 = scmp.ne.s32.totalorder %s1867_s18, %s1868_s19  ;;  %p1874_p0 = scmp.lt.s32.totalorder %s1867_s18, %s2219_s0 }
  0x2a   : > { %p1875_p2 = scmp.lt.s32.totalorder %s1873_s27, %s1868_s19 }
  0x2b   : > { %p1871_p10 = pnand %p1870_p9, %p1869_p7 }
  0x2c   : > { %p1876_p6 = por %p1875_p2, %p1874_p0 }
  0x2d   : > { %p1872_p11 = pneg %p1871_p10 }
  0x2f   : > { %p1877_p4 = pnand %p1876_p6, %p1872_p11 }
  0x31   : > { %1880 = shalt.err (!%p1877_p4)
}
  0x32   : > { %1638 = dma.hbm_to_vmem [thread:$0]  (!%p2122_p8), %s277_s12, 128, %s279_s14, %s267_s16  }
  0x33   : > { %287 = sbr.rel (%p2051_p3) target bundleno = 1031 (0x407), region = 44  ;;  %s2139_s26 = sand.u32 (!%p2051_p3), 1, %s1966_s22  }
  0x34   : > { %s1224_s13 = sshll.u32 (!%p2051_p3), %s2139_s26, 3  ;;  %s290_s7 = scalar_lea.sflag (!%p2051_p3), [#allocation4], %s2139_s26 }
  0x35   : > { %s293_s18 = scalar_lea.vmem (!%p2051_p3), [#allocation3], %s1224_s13 }
  0x38   : > { %1941 = dma.done.wait (%p2104_p12), %s290_s7, 128  }
  0x39   : > { %1943 = vsyncadd (%p2104_p12), %s290_s7, 4294967168 }
  0x3a   : > { %1945 = dma.done.wait (%p46_p1), [#allocation7], 1152  }
  0x3b   : > { %1947 = vsyncadd (%p46_p1), [#allocation7], 4294966144 }
  0x3c   : > { %1949 = dma.done.wait (%p46_p1), [#allocation10], 4160  }
  0x3d   : > { %1951 = vsyncadd (%p46_p1), [#allocation10], 4294963136 }
  0x3e   : > { %1953 = dma.done.wait (%p46_p1), [#allocation13], 4096  }
  0x3f   : > { %1955 = vsyncadd (%p46_p1), [#allocation13], 4294963200  ;;  %v2161_v0 = vld [vmem:[%s293_s18] sm:$0xff]  ;;  %v1985_v1 = vmov 128.0   ;;  %v1986_v12 = vmov 127.0   ;;  %v1530_v13 = vld [vmem:[#allocation8 + $0x38] sm:$0xff] }
  0x40   : > { %351 = vadd.xlane.f32.xlu0 %v2161_v0  ;;  %1704 = vrcp.f32 %v1985_v1  ;;  %459 = vmatpush.bf16.msra.mxu0 %v1530_v13  ;;  %v1529_v14 = vld [vmem:[#allocation8 + $0x30] sm:$0xff]  ;;  %v1528_v17 = vld [vmem:[#allocation8 + $0x28] sm:$0xff]  ;;  %v1527_v19 = vld [vmem:[#allocation8 + $0x20] sm:$0xff]  ;;  %s1520_s29 = sshll.u32 %s2046_s28, 3  ;;  %s347_s15 = scalar_lea.vmem [#allocation14], %s1224_s13 }
  0x41   : > { %1706 = vrcp.f32 %v1986_v12  ;;  %v1526_v21 = vld [vmem:[#allocation8 + $0x18] sm:$0xff]  ;;  %v1525_v23 = vld [vmem:[#allocation8 + $0x10] sm:$0xff]  ;;  %v1524_v25 = vld [vmem:[#allocation8 + $0x8] sm:$0xff]  ;;  %s1090_s14 = scalar_lea.hbm %s2225_s6, %s1520_s29  ;;  %s1092_s16 = sshll.u32 %s347_s15, 4  ;;  %s1093_s16 = int_to_ptr.vmem [resolvable:$true] %s1092_s16 }
  0x42   : > { %v1523_v28 = vld [vmem:[#allocation8] sm:$0xff]  ;;  %v1698_v40 = vld [vmem:[#allocation6] ss:$0 sm:$0xff]  ;;  %v1699_v43 = vld [vmem:[#allocation6 + $0x1] ss:$0 sm:$0xff]  ;;  %s1094_s19 = sshll.u32 %s1090_s14, 4  ;;  %s1095_s19 = int_to_ptr.hbm [resolvable:$true] %s1094_s19 }
  0x43   : > { %v1700_v47 = vld [vmem:[#allocation6 + $0x2] ss:$0 sm:$0xff]  ;;  %v1377_v56 = vld [vmem:[#allocation9 + $0xe0] sm:$0xf]  ;;  %v1561_v57 = vld [vmem:[#allocation9 + $0xec] sm:$0xf0] }
  0x44   : > { %460 = vmatpush.bf16.msra.mxu0 %v1529_v14  ;;  %v1559_v58 = vld [vmem:[#allocation9 + $0xe4] sm:$0xf]  ;;  %v1378_v59 = vor.u32 %v1561_v57, %v1377_v56  ;;  %v1379_v60 = vld [vmem:[#allocation9 + $0xf0] sm:$0xf0]  ;;  %v1385_v61 = vld [vmem:[#allocation9 + $0xe8] sm:$0xf] }
  0x45   : > { %v1562_v62 = vld [vmem:[#allocation9 + $0xf4] sm:$0xf0]  ;;  %v1382_v63 = vor.u32 %v1559_v58, %v1379_v60  ;;  %v1560_v1 = vld [vmem:[#allocation9 + $0xec] sm:$0xf]  ;;  %v1371_v14 = vld [vmem:[#allocation9 + $0xd8] sm:$0xf0] }
  0x46   : > { %v1705_v2 = vpop.eup %1704  ;;  %707 = vmatpush.bf16.msra.mxu1 %v1378_v59  ;;  %v1556_v13 = vld [vmem:[#allocation9 + $0xcc] sm:$0xf]  ;;  %v1539_v57 = vld [vmem:[#allocation9 + $0x44] sm:$0xf]  ;;  %v1299_v58 = vld [vmem:[#allocation9 + $0x50] sm:$0xf0] }
  0x47   : > { %v354_v3 = vmul.f32 128.0, %v1705_v2  ;;  %vm358_vm0 = vweird.f32 %v1705_v2  ;;  %v1707_v15 = vpop.eup %1706  ;;  %720 = vmatpush.bf16.msra.mxu2 %v1382_v63  ;;  %v1305_v59 = vld [vmem:[#allocation9 + $0x48] sm:$0xf]  ;;  %v1307_v63 = vld [vmem:[#allocation9 + $0x58] sm:$0xf0]  ;;  %s1080_s28 = scalar_lea.sflag [#allocation5], %s2139_s26 }
  0x48   : > { %v366_v16 = vmul.f32 127.0, %v1707_v15  ;;  %461 = vmatpush.bf16.msra.mxu0 %v1528_v17  ;;  %vm370_vm1 = vweird.f32 %v1707_v15  ;;  %v1553_v17 = vld [vmem:[#allocation9 + $0xac] sm:$0xf0]  ;;  %s1910_s8 = sshra.s32 %s1095_s19, 4  ;;  %s1916_s13 = scalar_lea.hbm %s2225_s6, 16  ;;  %s1911_s8 = int_to_ptr.hbm [resolvable:$true] %s1910_s8 }
  0x49   : > { %v355_v4 = vsub.f32 1.0, %v354_v3  ;;  %s1912_s27 = scalar_lea.hbm %s1911_s8, 8  ;;  %p1917_p12 = scmp.lt.s32.totalorder %s1911_s8, %s2225_s6 }
  0x4a   : > { %v367_v18 = vsub.f32 1.0, %v366_v16  ;;  %v1345_v16 = vld [vmem:[#allocation9 + $0xa0] sm:$0xf]  ;;  %p1913_p1 = scmp.ne.s32.totalorder %s1911_s8, %s1912_s27  ;;  %p1918_p8 = scmp.lt.s32.totalorder %s1916_s13, %s1912_s27 }
  0x4b   : > { %v356_v5 = vmul.f32 %v1705_v2, %v355_v4  ;;  %v1361_v4 = vld [vmem:[#allocation9 + $0xc0] sm:$0xf] }
  0x4c   : > { %v368_v20 = vmul.f32 %v1707_v15, %v367_v18  ;;  %462 = vmatpush.bf16.msra.mxu0 %v1527_v19  ;;  %v1551_v18 = vld [vmem:[#allocation9 + $0xa4] sm:$0xf]  ;;  %v1346_v19 = vor.u32 %v1553_v17, %v1345_v16  ;;  %p1914_p3 = pnand %p1913_p1, %p2108_p13  ;;  %p1919_p7 = por %p1918_p8, %p1917_p12 }
  0x4d   : > { %v357_v6 = vadd.f32 %v1705_v2, %v356_v5  ;;  %v1557_v5 = vld [vmem:[#allocation9 + $0xcc] sm:$0xf0]  ;;  %v1531_v16 = vld [vmem:[#allocation9 + $0x4] sm:$0xf] }
  0x4e   : > { %v369_v22 = vadd.f32 %v1707_v15, %v368_v20  ;;  %v1347_v20 = vld [vmem:[#allocation9 + $0xb0] sm:$0xf0]  ;;  %p1915_p4 = pneg %p1914_p3 }
  0x4f   : > { %v2164_v7 = vsel %vm358_vm0, %v1705_v2, %v357_v6  ;;  %v1387_v2 = vld [vmem:[#allocation9 + $0xf8] sm:$0xf0]  ;;  %v1555_v6 = vld [vmem:[#allocation9 + $0xc4] sm:$0xf] }
  0x50   : > { %463 = vmatpush.bf16.msra.mxu0 %v1526_v21  ;;  %v2168_v24 = vsel %vm370_vm1, %v1707_v15, %v369_v22  ;;  %v1390_v3 = vor.u32 %v1560_v1, %v1387_v2  ;;  %v1374_v15 = vor.u32 %v1556_v13, %v1371_v14  ;;  %v1353_v21 = vld [vmem:[#allocation9 + $0xa8] sm:$0xf]  ;;  %v1554_v22 = vld [vmem:[#allocation9 + $0xb4] sm:$0xf0]  ;;  %v1281_v2 = vld [vmem:[#allocation9 + $0x20] sm:$0xf]  ;;  %p1920_p9 = pnand %p1919_p7, %p1915_p4 }
  0x51   : > { %v1265_v14 = vld [vmem:[#allocation9] sm:$0xf] }
  0x54   : > { %464 = vmatpush.bf16.msra.mxu0 %v1525_v23  ;;  %v1350_v23 = vor.u32 %v1551_v18, %v1347_v20  ;;  %v1273_v20 = vld [vmem:[#allocation9 + $0x8] sm:$0xf] }
  0x58   : > { %465 = vmatpush.bf16.msra.mxu0 %v1524_v25  ;;  %v1354_v25 = vor.u32 %v1554_v22, %v1353_v21  ;;  %v1534_v21 = vld [vmem:[#allocation9 + $0x14] sm:$0xf0] }
  0x5c   : > { %466 = vmatpush.bf16.msra.mxu0 %v1523_v28 }
  0x60   : > { %746 = vmatpush.bf16.msrb.mxu0 %v1390_v3  ;;  %v1537_v3 = vld [vmem:[#allocation9 + $0x2c] sm:$0xf0] }
  0x64   : > { %747 = vmatpush.bf16.msrb.mxu0 %v1374_v15  ;;  %v1533_v15 = vld [vmem:[#allocation9 + $0xc] sm:$0xf0] }
  0xb3   : > { %v352_v8 = vpop.xlane.xlu0 %351 }
  0xb4   : > { %v360_v9 = vmul.f32 %v2164_v7, %v352_v8  ;;  %v1363_v8 = vld [vmem:[#allocation9 + $0xd0] sm:$0xf0] }
  0xb6   : > { %v361_v10 = vsub.f32 %v2161_v0, %v360_v9  ;;  %v1369_v9 = vld [vmem:[#allocation9 + $0xc8] sm:$0xf] }
  0xb8   : > { %v362_v11 = vmul.f32 %v361_v10, %v361_v10 }
  0xba   : > { %363 = vadd.xlane.f32.xlu0 %v362_v11  ;;  %v1366_v11 = vor.u32 %v1555_v6, %v1363_v8  ;;  %v1283_v6 = vld [vmem:[#allocation9 + $0x30] sm:$0xf0]  ;;  %v1538_v8 = vld [vmem:[#allocation9 + $0x34] sm:$0xf0] }
  0xbc   : > { %721 = vmatpush.bf16.msra.mxu2 %v1366_v11  ;;  %v1282_v11 = vor.u32 %v1537_v3, %v1281_v2  ;;  %v1702_v3 = vld [vmem:[#allocation6 + $0x4] ss:$0 sm:$0xff] }
  0xc0   : > { %722 = vmatpush.bf16.msra.mxu2 %v1350_v23  ;;  %v1532_v23 = vld [vmem:[#allocation9 + $0xc] sm:$0xf] }
 0x12d   : > { %v364_v26 = vpop.xlane.xlu0 %363 }
 0x12e   : > { %v372_v27 = vmul.f32 %v2168_v24, %v364_v26  ;;  %v1552_v26 = vld [vmem:[#allocation9 + $0xac] sm:$0xf] }
 0x130   : > { %1708 = vrsqrt.f32 %v372_v27  ;;  %vm380_vm2 = vcmp.eq.f32.partialorder %v372_v27, inf  ;;  %v383_v36 = vand.u32 2147483648, %v372_v27  ;;  %vm382_vm3 = vcmp.eq.f32.partialorder %v372_v27, 0.0 }
 0x136   : > { %v1709_v29 = vpop.eup %1708 }
 0x137   : > { %v374_v30 = vmul.f32 %v1709_v29, %v372_v27 }
 0x139   : > { %v375_v31 = vmul.f32 %v1709_v29, %v374_v30  ;;  %v1549_v30 = vld [vmem:[#allocation9 + $0x8c] sm:$0xf0] }
 0x13b   : > { %v376_v32 = vmul.f32 0.5, %v375_v31  ;;  %v1547_v31 = vld [vmem:[#allocation9 + $0x84] sm:$0xf] }
 0x13d   : > { %v377_v33 = vsub.f32 1.5, %v376_v32 }
 0x13f   : > { %v378_v34 = vmul.f32 %v1709_v29, %v377_v33  ;;  %v1329_v29 = vld [vmem:[#allocation9 + $0x80] sm:$0xf]  ;;  %v1331_v33 = vld [vmem:[#allocation9 + $0x90] sm:$0xf0] }
 0x140   : > { %v1330_v32 = vor.u32 %v1549_v30, %v1329_v29 }
 0x141   : > { %v379_v35 = vmul.f32 %v378_v34, %v372_v27  ;;  %v1337_v34 = vld [vmem:[#allocation9 + $0x88] sm:$0xf] }
 0x143   : > { %v381_v37 = vsel %vm380_vm2, %v372_v27, %v379_v35  ;;  %v1355_v27 = vld [vmem:[#allocation9 + $0xb8] sm:$0xf0]  ;;  %v1550_v35 = vld [vmem:[#allocation9 + $0x94] sm:$0xf0] }
 0x144   : > { %v384_v38 = vsel %vm382_vm3, %v383_v36, %v381_v37  ;;  %v1358_v28 = vor.u32 %v1552_v26, %v1355_v27  ;;  %v1334_v36 = vor.u32 %v1547_v31, %v1331_v33  ;;  %v1338_v37 = vor.u32 %v1550_v35, %v1337_v34  ;;  %v1594_v33 = vld [vmem:[#allocation12 + $0xf8] sm:$0xff] }
 0x145   : > { %v385_v39 = vadd.f32 1e-06, %v384_v38  ;;  %v1548_v38 = vld [vmem:[#allocation9 + $0x8c] sm:$0xf]  ;;  %v1266_v26 = vor.u32 %v1533_v15, %v1265_v14  ;;  %v1586_v34 = vld [vmem:[#allocation12 + $0xb8] sm:$0xff]  ;;  %v1571_v14 = vld [vmem:[#allocation12 + $0x40] sm:$0xff] }
 0x146   : > { %748 = vmatpush.bf16.msrb.mxu0 %v1358_v28  ;;  %723 = vmatpush.bf16.msra.mxu2 %v1334_v36  ;;  %v1274_v28 = vor.u32 %v1534_v21, %v1273_v20  ;;  %v1569_v36 = vld [vmem:[#allocation12 + $0x30] sm:$0xff]  ;;  %v1579_v15 = vld [vmem:[#allocation12 + $0x80] sm:$0xff] }
 0x147   : > { %1710 = vrcp.f32 %v385_v39  ;;  %v1339_v39 = vld [vmem:[#allocation9 + $0x98] sm:$0xf0] }
 0x14d   : > { %v1711_v41 = vpop.eup %1710 }
 0x14e   : > { %v387_v42 = vmul.f32 %v1711_v41, %v361_v10  ;;  %v1558_v10 = vld [vmem:[#allocation9 + $0xd4] sm:$0xf0]  ;;  %v1342_v41 = vor.u32 %v1548_v38, %v1339_v39 }
 0x14f   : > { %v1370_v12 = vor.u32 %v1558_v10, %v1369_v9  ;;  %v1536_v9 = vld [vmem:[#allocation9 + $0x2c] sm:$0xf]  ;;  %v1291_v10 = vld [vmem:[#allocation9 + $0x38] sm:$0xf0]  ;;  %v1577_v38 = vld [vmem:[#allocation12 + $0x70] sm:$0xff] }
 0x150   : > { %v389_v44 = vmul.f32 %v1698_v40, %v387_v42  ;;  %v1313_v40 = vld [vmem:[#allocation9 + $0x60] sm:$0xf]  ;;  %v1545_v42 = vld [vmem:[#allocation9 + $0x6c] sm:$0xf0]  ;;  %749 = vmatpush.bf16.msrb.mxu0 %v1342_v41  ;;  %v1294_v18 = vor.u32 %v1536_v9, %v1291_v10  ;;  %v1585_v39 = vld [vmem:[#allocation12 + $0xb0] sm:$0xff] }
 0x151   : > { %v1573_v9 = vld [vmem:[#allocation12 + $0x50] sm:$0xff] }
 0x152   : > { %v391_v45 = vadd.f32 %v1699_v43, %v389_v44  ;;  %v1543_v43 = vld [vmem:[#allocation9 + $0x64] sm:$0xf]  ;;  %v1315_v44 = vld [vmem:[#allocation9 + $0x70] sm:$0xf0] }
 0x153   : > { %v1581_v10 = vld [vmem:[#allocation12 + $0x90] sm:$0xff] }
 0x154   : > { %v392_v46 = vpack.c.bf16 %v391_v45, %v391_v45  ;;  %v1314_v45 = vor.u32 %v1545_v42, %v1313_v40  ;;  %v1568_v42 = vld [vmem:[#allocation12 + $0x28] sm:$0xff] }
 0x156   : > { %467 = vmatmul.bf16.vlgmr.msra.gmra.mxu0 %v392_v46  ;;  %v1318_v46 = vor.u32 %v1543_v43, %v1315_v44  ;;  %v1592_v43 = vld [vmem:[#allocation12 + $0xe8] sm:$0xff] }
 0x157   : > { %v1576_v44 = vld [vmem:[#allocation12 + $0x68] sm:$0xff] }
 0x158   : > { %724 = vmatpush.bf16.msra.mxu2 %v1318_v46 }
 0x1d3   : > { %v468_v48 = vpop.f32.mrf.mxu0 }
 0x1d4   : > { %v469_v49 = vadd.f32 %v1700_v47, %v468_v48  ;;  %v1321_v47 = vld [vmem:[#allocation9 + $0x68] sm:$0xf]  ;;  %v1546_v48 = vld [vmem:[#allocation9 + $0x74] sm:$0xf0] }
 0x1d6   : > { %v2172_v50 = vadd.f32 %v469_v49, %v2161_v0  ;;  %v1386_v0 = vor.u32 %v1562_v62, %v1385_v61  ;;  %v1544_v49 = vld [vmem:[#allocation9 + $0x6c] sm:$0xf]  ;;  %v1542_v61 = vld [vmem:[#allocation9 + $0x54] sm:$0xf0] }
 0x1d7   : > { %v1540_v62 = vld [vmem:[#allocation9 + $0x4c] sm:$0xf]  ;;  %v1306_v1 = vor.u32 %v1542_v61, %v1305_v59  ;;  %v1590_v59 = vld [vmem:[#allocation12 + $0xd8] sm:$0xff] }
 0x1d8   : > { %477 = vadd.xlane.f32.xlu1 %v2172_v50  ;;  %733 = vmatpush.bf16.msra.mxu3 %v1386_v0  ;;  %v1302_v0 = vor.u32 %v1539_v57, %v1299_v58  ;;  %v1566_v58 = vld [vmem:[#allocation12 + $0x18] sm:$0xff] }
 0x1d9   : > { %v1582_v61 = vld [vmem:[#allocation12 + $0x98] sm:$0xff] }
 0x1da   : > { %725 = vmatpush.bf16.msra.mxu2 %v1302_v0  ;;  %v1701_v0 = vld [vmem:[#allocation6 + $0x3] ss:$0 sm:$0xff] }
 0x1db   : > { %v470_v51 = vpop.f32.mrf.mxu0 }
 0x1dc   : > { %734 = vmatpush.bf16.msra.mxu3 %v1370_v12  ;;  %v1322_v51 = vor.u32 %v1546_v48, %v1321_v47  ;;  %v1567_v48 = vld [vmem:[#allocation12 + $0x20] sm:$0xff] }
 0x1e0   : > { %735 = vmatpush.bf16.msra.mxu3 %v1354_v25  ;;  %v1275_v25 = vld [vmem:[#allocation9 + $0x18] sm:$0xf0] }
 0x1e1   : > { %v1278_v29 = vor.u32 %v1532_v23, %v1275_v25 }
 0x1e4   : > { %736 = vmatpush.bf16.msra.mxu3 %v1338_v37  ;;  %v1593_v37 = vld [vmem:[#allocation12 + $0xf0] sm:$0xff] }
 0x1e8   : > { %737 = vmatpush.bf16.msra.mxu3 %v1322_v51 }
 0x1ec   : > { %738 = vmatpush.bf16.msra.mxu3 %v1306_v1 }
 0x24b   : > { %v478_v52 = vpop.xlane.xlu1 %477 }
 0x24c   : > { %v479_v53 = vmul.f32 %v478_v52, %v2164_v7  ;;  %v1362_v7 = vor.u32 %v1557_v5, %v1361_v4  ;;  %v1323_v52 = vld [vmem:[#allocation9 + $0x78] sm:$0xf0]  ;;  %v1535_v4 = vld [vmem:[#allocation9 + $0x24] sm:$0xf]  ;;  %v1310_v5 = vor.u32 %v1540_v62, %v1307_v63  ;;  %v1565_v62 = vld [vmem:[#allocation12 + $0x10] sm:$0xff] }
 0x24d   : > { %v1326_v56 = vor.u32 %v1544_v49, %v1323_v52  ;;  %v1286_v12 = vor.u32 %v1535_v4, %v1283_v6  ;;  %v1591_v49 = vld [vmem:[#allocation12 + $0xe0] sm:$0xff]  ;;  %v1589_v63 = vld [vmem:[#allocation12 + $0xd0] sm:$0xff] }
 0x24e   : > { %v2177_v54 = vsub.f32 %v2172_v50, %v479_v53  ;;  %708 = vmatpush.bf16.msra.mxu1 %v1362_v7  ;;  %v1297_v53 = vld [vmem:[#allocation9 + $0x40] sm:$0xf]  ;;  %v1289_v7 = vld [vmem:[#allocation9 + $0x28] sm:$0xf] }
 0x24f   : > { %750 = vmatpush.bf16.msrb.mxu0 %v1326_v56  ;;  %v1290_v13 = vor.u32 %v1538_v8, %v1289_v7  ;;  %726 = vmatpush.bf16.msra.mxu2 %v1286_v12  ;;  %v1575_v52 = vld [vmem:[#allocation12 + $0x60] sm:$0xff]  ;;  %v1564_v7 = vld [vmem:[#allocation12 + $0x8] sm:$0xff] }
 0x250   : > { %v481_v55 = vmul.f32 %v2177_v54, %v2177_v54  ;;  %v1588_v8 = vld [vmem:[#allocation12 + $0xc8] sm:$0xff]  ;;  %v1587_v12 = vld [vmem:[#allocation12 + $0xc0] sm:$0xff] }
 0x251   : > { %739 = vmatpush.bf16.msra.mxu3 %v1290_v13  ;;  %v1580_v13 = vld [vmem:[#allocation12 + $0x88] sm:$0xff] }
 0x252   : > { %482 = vadd.xlane.f32.xlu1 %v481_v55  ;;  %709 = vmatpush.bf16.msra.mxu1 %v1346_v19  ;;  %v1541_v55 = vld [vmem:[#allocation9 + $0x4c] sm:$0xf0]  ;;  %v1267_v19 = vld [vmem:[#allocation9 + $0x10] sm:$0xf0] }
 0x253   : > { %v1298_v60 = vor.u32 %v1541_v55, %v1297_v53  ;;  %751 = vmatpush.bf16.msrb.mxu0 %v1310_v5  ;;  %v1270_v27 = vor.u32 %v1531_v16, %v1267_v19  ;;  %v1583_v53 = vld [vmem:[#allocation12 + $0xa0] sm:$0xff]  ;;  %v537_v16 = vld [vmem:[#allocation11] sm:$0xf] }
 0x254   : > { %v540_v25 = vperm.slane %v537_v16, 1 }
 0x255   : > { %727 = vmatpush.bf16.msra.mxu2 %v1270_v27  ;;  %740 = vmatpush.bf16.msra.mxu3 %v1274_v28  ;;  %v541_v27 = vperm.slane %v537_v16, 2 }
 0x256   : > { %710 = vmatpush.bf16.msra.mxu1 %v1330_v32  ;;  %v1570_v32 = vld [vmem:[#allocation12 + $0x38] sm:$0xff] }
 0x257   : > { %752 = vmatpush.bf16.msrb.mxu0 %v1294_v18  ;;  %v542_v18 = vperm.slane %v537_v16, 3 }
 0x259   : > { %1051 = vmatpush.bf16.msrb.mxu3 %v1586_v34 }
 0x25a   : > { %711 = vmatpush.bf16.msra.mxu1 %v1314_v45  ;;  %v1584_v45 = vld [vmem:[#allocation12 + $0xa8] sm:$0xff] }
 0x25b   : > { %753 = vmatpush.bf16.msrb.mxu0 %v1278_v29 }
 0x25d   : > { %1052 = vmatpush.bf16.msrb.mxu3 %v1585_v39 }
 0x25e   : > { %712 = vmatpush.bf16.msra.mxu1 %v1298_v60  ;;  %v1574_v60 = vld [vmem:[#allocation12 + $0x58] sm:$0xff] }
 0x25f   : > { %1064 = vmatpush.bf16.msra.mxu0 %v1594_v33 }
 0x261   : > { %1053 = vmatpush.bf16.msrb.mxu3 %v1584_v45 }
 0x262   : > { %713 = vmatpush.bf16.msra.mxu1 %v1282_v11  ;;  %v1563_v11 = vld [vmem:[#allocation12] sm:$0xff] }
 0x263   : > { %1065 = vmatpush.bf16.msra.mxu0 %v1593_v37 }
 0x265   : > { %1054 = vmatpush.bf16.msrb.mxu3 %v1583_v53 }
 0x266   : > { %714 = vmatpush.bf16.msra.mxu1 %v1266_v26 }
 0x267   : > { %1066 = vmatpush.bf16.msra.mxu0 %v1592_v43  ;;  %v1703_v43 = vld [vmem:[#allocation6 + $0x5] ss:$0 sm:$0xff] }
 0x269   : > { %1055 = vmatpush.bf16.msrb.mxu3 %v1582_v61 }
 0x26a   : > { %1025 = vmatpush.bf16.msrb.mxu1 %v1570_v32 }
 0x26b   : > { %1067 = vmatpush.bf16.msra.mxu0 %v1591_v49 }
 0x26d   : > { %1056 = vmatpush.bf16.msrb.mxu3 %v1581_v10 }
 0x26e   : > { %1026 = vmatpush.bf16.msrb.mxu1 %v1569_v36 }
 0x26f   : > { %1068 = vmatpush.bf16.msra.mxu0 %v1590_v59 }
 0x271   : > { %1057 = vmatpush.bf16.msrb.mxu3 %v1580_v13 }
 0x272   : > { %1027 = vmatpush.bf16.msrb.mxu1 %v1568_v42 }
 0x273   : > { %1069 = vmatpush.bf16.msra.mxu0 %v1589_v63 }
 0x275   : > { %1058 = vmatpush.bf16.msrb.mxu3 %v1579_v15 }
 0x276   : > { %1028 = vmatpush.bf16.msrb.mxu1 %v1567_v48 }
 0x277   : > { %1070 = vmatpush.bf16.msra.mxu0 %v1588_v8 }
 0x27a   : > { %1029 = vmatpush.bf16.msrb.mxu1 %v1566_v58 }
 0x27b   : > { %1071 = vmatpush.bf16.msra.mxu0 %v1587_v12 }
 0x27e   : > { %1030 = vmatpush.bf16.msrb.mxu1 %v1565_v62 }
 0x282   : > { %1031 = vmatpush.bf16.msrb.mxu1 %v1564_v7 }
 0x286   : > { %1032 = vmatpush.bf16.msrb.mxu1 %v1563_v11 }
 0x2c5   : > { %v483_v17 = vpop.xlane.xlu1 %482 }
 0x2c6   : > { %v484_v22 = vmul.f32 %v483_v17, %v2168_v24  ;;  %v1578_v24 = vld [vmem:[#allocation12 + $0x78] sm:$0xff]  ;;  %v539_v17 = vperm.slane %v537_v16, 0 }
 0x2c7   : > { %1038 = vmatpush.bf16.msrb.mxu2 %v1578_v24 }
 0x2c8   : > { %1712 = vrsqrt.f32 %v484_v22  ;;  %vm492_vm4 = vcmp.eq.f32.partialorder %v484_v22, inf  ;;  %v495_v51 = vand.u32 2147483648, %v484_v22  ;;  %vm494_vm5 = vcmp.eq.f32.partialorder %v484_v22, 0.0 }
 0x2cb   : > { %1039 = vmatpush.bf16.msrb.mxu2 %v1577_v38 }
 0x2ce   : > { %v1713_v30 = vpop.eup %1712 }
 0x2cf   : > { %v486_v31 = vmul.f32 %v1713_v30, %v484_v22  ;;  %1040 = vmatpush.bf16.msrb.mxu2 %v1576_v44 }
 0x2d1   : > { %v487_v35 = vmul.f32 %v1713_v30, %v486_v31 }
 0x2d3   : > { %v488_v40 = vmul.f32 0.5, %v487_v35  ;;  %1041 = vmatpush.bf16.msrb.mxu2 %v1575_v52 }
 0x2d5   : > { %v489_v41 = vsub.f32 1.5, %v488_v40 }
 0x2d7   : > { %v490_v46 = vmul.f32 %v1713_v30, %v489_v41  ;;  %1042 = vmatpush.bf16.msrb.mxu2 %v1574_v60 }
 0x2d9   : > { %v491_v47 = vmul.f32 %v490_v46, %v484_v22 }
 0x2db   : > { %v493_v55 = vsel %vm492_vm4, %v484_v22, %v491_v47  ;;  %1043 = vmatpush.bf16.msrb.mxu2 %v1573_v9 }
 0x2dc   : > { %v496_v56 = vsel %vm494_vm5, %v495_v51, %v493_v55 }
 0x2dd   : > { %v497_v57 = vadd.f32 1e-06, %v496_v56 }
 0x2df   : > { %1714 = vrcp.f32 %v497_v57 }
 0x2e5   : > { %v1715_v1 = vpop.eup %1714 }
 0x2e6   : > { %v499_v2 = vmul.f32 %v1715_v1, %v2177_v54  ;;  %v1572_v54 = vld [vmem:[#allocation12 + $0x48] sm:$0xff] }
 0x2e7   : > { %1044 = vmatpush.bf16.msrb.mxu2 %v1572_v54 }
 0x2e8   : > { %v501_v4 = vmul.f32 %v1701_v0, %v499_v2 }
 0x2ea   : > { %v503_v5 = vadd.f32 %v1702_v3, %v501_v4 }
 0x2eb   : > { %1045 = vmatpush.bf16.msrb.mxu2 %v1571_v14 }
 0x2ec   : > { %v504_v6 = vpack.c.bf16 %v503_v5, %v503_v5 }
 0x2ee   : > { %715 = vmatmul.bf16.vlgmr.msra.gmra.mxu1 %v504_v6  ;;  %728 = vmatmul.bf16.vlgmr.msra.gmra.mxu2 %v504_v6 }
 0x2ef   : > { %741 = vmatmul.bf16.vlgmr.msra.gmra.mxu3 %v504_v6  ;;  %754 = vmatmul.bf16.vlgmr.msrb.gmra.mxu0 %v504_v6 }
 0x36b   : > { %v716_v19 = vpop.f32.mrf.mxu1 }
 0x36c   : > { %v717_v20 = vadd.f32 %v716_v19, %v539_v17  ;;  %v755_v21 = vpop.f32.mrf.mxu0 }
 0x36d   : > { %v756_v22 = vadd.f32 %v755_v21, %v542_v18 }
 0x36e   : > { %v759_v23 = vmax.f32 %v717_v20, 0.0 }
 0x36f   : > { %v762_v26 = vmax.f32 %v756_v22, 0.0 }
 0x370   : > { %v763_v28 = vpack.c.bf16 %v759_v23, %v759_v23 }
 0x371   : > { %v766_v29 = vpack.c.bf16 %v762_v26, %v762_v26  ;;  %v729_v30 = vpop.f32.mrf.mxu2 }
 0x372   : > { %v730_v31 = vadd.f32 %v729_v30, %v540_v25  ;;  %v742_v32 = vpop.f32.mrf.mxu3  ;;  %1033 = vmatmul.bf16.vlgmr.msrb.gmra.mxu1 %v763_v28 }
 0x373   : > { %v743_v33 = vadd.f32 %v742_v32, %v541_v27  ;;  %1072 = vmatmul.bf16.vlgmr.msra.gmra.mxu0 %v766_v29  ;;  %v718_v24 = vpop.f32.mrf.mxu1 }
 0x374   : > { %v760_v34 = vmax.f32 %v730_v31, 0.0  ;;  %v757_v35 = vpop.f32.mrf.mxu0 }
 0x375   : > { %v761_v36 = vmax.f32 %v743_v33, 0.0 }
 0x376   : > { %v764_v37 = vpack.c.bf16 %v760_v34, %v760_v34 }
 0x377   : > { %v765_v38 = vpack.c.bf16 %v761_v36, %v761_v36 }
 0x378   : > { %1046 = vmatmul.bf16.vlgmr.msrb.gmra.mxu2 %v764_v37 }
 0x379   : > { %1059 = vmatmul.bf16.vlgmr.msrb.gmra.mxu3 %v765_v38  ;;  %v731_v39 = vpop.f32.mrf.mxu2 }
 0x37a   : > { %v744_v40 = vpop.f32.mrf.mxu3 }
 0x3ef   : > { %v1034_v41 = vpop.f32.mrf.mxu1 }
 0x3f0   : > { %v1073_v42 = vpop.f32.mrf.mxu0  ;;  %v1035_v46 = vadd.f32 %v1703_v43, %v1034_v41 }
 0x3f7   : > { %v1036_v44 = vpop.f32.mrf.mxu1 }
 0x3f8   : > { %v1075_v45 = vpop.f32.mrf.mxu0 }
 0x3fb   : > { %v1047_v47 = vpop.f32.mrf.mxu2 }
 0x3fc   : > { %v1048_v48 = vadd.f32 %v1047_v47, %v1035_v46  ;;  %v1060_v49 = vpop.f32.mrf.mxu3 }
 0x3fe   : > { %v1061_v51 = vadd.f32 %v1060_v49, %v1048_v48 }
 0x400   : > { %v1074_v52 = vadd.f32 %v1073_v42, %v1061_v51 }
 0x402   : > { %v1077_v53 = vadd.f32 %v1074_v52, %v2172_v50 }
 0x403   : > { %v1049_v55 = vpop.f32.mrf.mxu2 }
 0x404   : > { %v1062_v56 = vpop.f32.mrf.mxu3  ;;  %1078 = vst [vmem:[%s347_s15] sm:$0xff] %v1077_v53 }
 0x405   : > { %1923 = shalt.err (!%p1920_p9)
}
 0x406   : > { %1617 = dma.vmem_to_hbm [thread:$0]  (%p2108_p13), %s1093_s16, 128, %s1095_s19, %s1080_s28  }
 0x407 PF: > { %s1106_s26 = sand.u32 1, %s1962_s21   ;;  %p2232_p10 = scmp.ge.s32.totalorder %s1974_s24, 2 }
 0x408   : > { %s1107_s29 = scalar_lea.sflag [#allocation5], %s1106_s26 }
 0x409   : > { %p1640_p11 = pnand %p2232_p10, %p2113_p5 }
 0x40b   : > { %p1641_p0 = pneg %p1640_p11 }
 0x40d   : > { %1957 = dma.done.wait (%p1641_p0), %s1107_s29, 128  }
 0x40e   : > { %1959 = vsyncadd (%p1641_p0), %s1107_s29, 4294967168  ;;  %p22_p2 = scmp.ge.s32.totalorder %s2088_s17, 4   ;;  %s2233_s21 = smov %s1966_s22 }
 0x40f   : > { %s2234_s22 = smov %s1970_s23  ;;  %s2235_s23 = smov %s2100_s20 }
 0x410   : > { %s2236_s24 = smov %s2088_s17  ;;  %24 = sbr.rel (!%p22_p2) target bundleno = 8 (0x8), region = 109 }
 0x415   :  { %1113 = vsyncpa [#allocation4], 1 }
 0x416   :  { %1115 = vsyncpa [#allocation4 + $0x1], 1 }
 0x417   :  { %1116 = vsyncpa [#allocation7], 1 }
 0x418   :  { %1117 = vsyncpa [#allocation10], 1 }
 0x419   :  { %1118 = vsyncpa [#allocation13], 1 }
 0x41a   :  { %1119 = vsyncpa [#allocation5], 1 }
 0x41b   :  { %1121 = vsyncpa [#allocation5 + $0x1], 1 }

// kernel: tpu_custom_call.1
= control target key start
LH: loop header
LB: loop body
LE: loop exit
PB: predicated region body
PF: predicated region fallthrough
CT: control target
= control target key end

     0   :  { %11 = vsyncpa [#allocation4], 0  ;;  %s2219_s0 = inlined_call_operand.hbm [shape: f32[16,128], index: 0, kind: input, shape index: {}]   ;;  %s2220_s1 = inlined_call_operand.hbm [shape: f32[6,128], index: 1, kind: input, shape index: {}]   ;;  %s2221_s2 = inlined_call_operand.hbm [shape: bf16[128,128], index: 2, kind: input, shape index: {}]   ;;  %s2222_s3 = inlined_call_operand.hbm [shape: bf16[128,512], index: 3, kind: input, shape index: {}]   ;;  %s2223_s4 = inlined_call_operand.hbm [shape: f32[1,512], index: 4, kind: input, shape index: {}]   ;;  %s2224_s5 = inlined_call_operand.hbm [shape: bf16[512,128], index: 5, kind: input, shape index: {}]   ;;  %s2225_s6 = inlined_call_operand.hbm [shape: f32[16,128], index: 6, kind: output, shape index: {}]  }
   0x1   :  { %13 = vsyncpa [#allocation4 + $0x1], 0 }
   0x2   :  { %14 = vsyncpa [#allocation7], 0 }
   0x3   :  { %15 = vsyncpa [#allocation10], 0 }
   0x4   :  { %16 = vsyncpa [#allocation13], 0 }
   0x5   :  { %17 = vsyncpa [#allocation5], 0 }
   0x6   :  { %19 = vsyncpa [#allocation5 + $0x1], 0  ;;  %s2022_s21 = smov 0   ;;  %s2024_s22 = smov 0  }
   0x7   :  { %s2026_s23 = smov 0   ;;  %s2028_s24 = smov 0  }
   0x8 LB: > { %s199_s27 = sshll.u32 %s2220_s1, 4  ;;  %s2046_s28 = sadd.s32 4294967295, %s1974_s24   ;;  %s1974_s24 = sphi %s2028_s24, %s2236_s24   ;;  %s1970_s23 = sphi %s2026_s23, %s2235_s23   ;;  %s1966_s22 = sphi %s2024_s22, %s2234_s22   ;;  %s1962_s21 = sphi %s2022_s21, %s2233_s21   ;;  %s200_s27 = int_to_ptr.hbm [resolvable:$true] %s199_s27 }
   0x9   : > { %p1214_p0 = scmp.ge.s32.totalorder %s1974_s24, 1  ;;  %p46_p1 = scmp.eq.s32.totalorder %s2046_s28, 0 }
   0xa   : > { %p187_p2 = scmp.lt.s32.totalorder %s1974_s24, 3  ;;  %s1976_s30 = smov [#allocation6]  }
   0xb   : > { %s201_s7 = sshll.u32 %s1976_s30, 4  ;;  %s224_s10 = sshll.u32 %s2222_s3, 4  ;;  %s202_s7 = int_to_ptr.vmem [resolvable:$true] %s201_s7  ;;  %s225_s10 = int_to_ptr.hbm [resolvable:$true] %s224_s10 }
   0xc   : > { %p2051_p3 = pnand %p1214_p0, %p187_p2  ;;  %s1977_s12 = smov [#allocation9]  }
   0xd   : > { %s226_s13 = sshll.u32 %s1977_s12, 4  ;;  %s1978_s14 = smov 256   ;;  %s227_s13 = int_to_ptr.vmem [resolvable:$true] %s226_s13 }
   0xe   : > { %p1619_p5 = pneg %p2051_p3  ;;  %s1979_s15 = smov 16  }
   0xf   : > { %s210_s18 = sshll.u32 %s2221_s2, 4  ;;  %s1980_s19 = smov [#allocation8]   ;;  %s211_s18 = int_to_ptr.hbm [resolvable:$true] %s210_s18 }
  0x10   : > { %p2063_p6 = pnand %p1619_p5, %p46_p1  ;;  %s212_s20 = sshll.u32 %s1980_s19, 4  ;;  %s213_s20 = int_to_ptr.vmem [resolvable:$true] %s212_s20 }
  0x11   : > { %s239_s30 = sshll.u32 %s2223_s4, 4  ;;  %s1983_s8 = smov [#allocation11]   ;;  %s240_s30 = int_to_ptr.hbm [resolvable:$true] %s239_s30 }
  0x12   : > { %1622 = dma.hbm_to_vmem [thread:$0]  (!%p2063_p6), %s200_s27, 128, %s202_s7, [#allocation7]  }
  0x13   : > { %1628 = dma.hbm_to_vmem [thread:$0]  (!%p2063_p6), %s225_s10, 4096, %s227_s13, [#allocation10], %s1978_s14, %s1978_s14, %s1979_s15  }
  0x14   : > { %s1981_s27 = smov 64   ;;  %s1982_s7 = smov 4  }
  0x15   : > { %1625 = dma.hbm_to_vmem [thread:$0]  (!%p2063_p6), %s211_s18, 1024, %s213_s20, [#allocation7], %s1981_s27, %s1981_s27, %s1982_s7  }
  0x16   : > { %s241_s9 = sshll.u32 %s1983_s8, 4  ;;  %s250_s13 = sshll.u32 %s2224_s5, 4  ;;  %s242_s9 = int_to_ptr.vmem [resolvable:$true] %s241_s9  ;;  %s251_s13 = int_to_ptr.hbm [resolvable:$true] %s250_s13 }
  0x17   : > { %1631 = dma.hbm_to_vmem [thread:$0]  (!%p2063_p6), %s240_s30, 64, %s242_s9, [#allocation10]  }
  0x18   : > { %s1984_s14 = smov [#allocation12]   ;;  %s1213_s16 = sadd.s32 4294967294, %s1974_s24  }
  0x19   : > { %s252_s15 = sshll.u32 %s1984_s14, 4  ;;  %s2088_s17 = sadd.s32 1, %s1974_s24   ;;  %s253_s15 = int_to_ptr.vmem [resolvable:$true] %s252_s15 }
  0x1a   : > { %1634 = dma.hbm_to_vmem [thread:$0]  (!%p2063_p6), %s251_s13, 4096, %s253_s15, [#allocation13], %s1981_s27, %s1981_s27, %s1982_s7  }
  0x1b   : > { %s32_s18 = sadd.s32 1, %s1970_s23  ;;  %s29_s19 = ssub.s32 %s1974_s24, %s2088_s17 }
  0x1c   : > { %p39_p7 = scmp.ne.s32.totalorder %s1970_s23, %s1966_s22  ;;  %p30_p8 = scmp.eq.s32.totalorder %s29_s19, 0 }
  0x1d   : > { %p40_p9 = scmp.eq.s32.totalorder %s1974_s24, 0  ;;  %p45_p10 = scmp.ne.s32.totalorder %s1966_s22, %s1962_s21 }
  0x1e   : > { %p174_p11 = scmp.eq.s32.totalorder %s2046_s28, 1  ;;  %p180_p0 = scmp.eq.s32.totalorder %s1213_s16, 1 }
  0x1f   : > { %s2100_s20 = scalar_select %p30_p8, %s1970_s23, %s32_s18  }
  0x20   : > { %p2104_p12 = por %p46_p1, %p45_p10  ;;  %p2108_p13 = por %p174_p11, %p39_p7 }
  0x21   : > { %p41_p2 = por %p40_p9, %p39_p7  ;;  %s266_s26 = sand.u32 1, %s1970_s23  }
  0x22   : > { %p2113_p5 = por %p180_p0, %p45_p10  ;;  %p1648_p6 = scmp.lt.s32.totalorder %s1974_s24, 2 }
  0x23   : > { %s1221_s27 = sshll.u32 %s266_s26, 3  ;;  %s1222_s7 = sshll.u32 %s1974_s24, 3 }
  0x24   : > { %s274_s10 = scalar_lea.hbm %s2219_s0, %s1222_s7  ;;  %s270_s13 = scalar_lea.vmem [#allocation3], %s1221_s27 }
  0x25   : > { %s276_s12 = sshll.u32 %s274_s10, 4  ;;  %s278_s14 = sshll.u32 %s270_s13, 4  ;;  %s277_s12 = int_to_ptr.hbm [resolvable:$true] %s276_s12  ;;  %s279_s14 = int_to_ptr.vmem [resolvable:$true] %s278_s14 }
  0x26   : > { %p2122_p8 = pnand %p1648_p6, %p41_p2  ;;  %s267_s16 = scalar_lea.sflag [#allocation4], %s266_s26 }
  0x27   : > { %s1866_s18 = sshra.s32 %s277_s12, 4  ;;  %s1873_s27 = scalar_lea.hbm %s2219_s0, 16  ;;  %s1867_s18 = int_to_ptr.hbm [resolvable:$true] %s1866_s18 }
  0x28   : > { %s1868_s19 = scalar_lea.hbm %s1867_s18, 8  ;;  %p1870_p9 = pneg %p2122_p8 }
  0x29   : > { %p1869_p7 = scmp.ne.s32.totalorder %s1867_s18, %s1868_s19  ;;  %p1874_p0 = scmp.lt.s32.totalorder %s1867_s18, %s2219_s0 }
  0x2a   : > { %p1875_p2 = scmp.lt.s32.totalorder %s1873_s27, %s1868_s19 }
  0x2b   : > { %p1871_p10 = pnand %p1870_p9, %p1869_p7 }
  0x2c   : > { %p1876_p6 = por %p1875_p2, %p1874_p0 }
  0x2d   : > { %p1872_p11 = pneg %p1871_p10 }
  0x2f   : > { %p1877_p4 = pnand %p1876_p6, %p1872_p11 }
  0x31   : > { %1880 = shalt.err (!%p1877_p4)
}
  0x32   : > { %1638 = dma.hbm_to_vmem [thread:$0]  (!%p2122_p8), %s277_s12, 128, %s279_s14, %s267_s16  }
  0x33   : > { %287 = sbr.rel (%p2051_p3) target bundleno = 1031 (0x407), region = 44  ;;  %s2139_s26 = sand.u32 (!%p2051_p3), 1, %s1966_s22  }
  0x34   : > { %s1224_s13 = sshll.u32 (!%p2051_p3), %s2139_s26, 3  ;;  %s290_s7 = scalar_lea.sflag (!%p2051_p3), [#allocation4], %s2139_s26 }
  0x35   : > { %s293_s18 = scalar_lea.vmem (!%p2051_p3), [#allocation3], %s1224_s13 }
  0x38   : > { %1941 = dma.done.wait (%p2104_p12), %s290_s7, 128  }
  0x39   : > { %1943 = vsyncadd (%p2104_p12), %s290_s7, 4294967168 }
  0x3a   : > { %1945 = dma.done.wait (%p46_p1), [#allocation7], 1152  }
  0x3b   : > { %1947 = vsyncadd (%p46_p1), [#allocation7], 4294966144 }
  0x3c   : > { %1949 = dma.done.wait (%p46_p1), [#allocation10], 4160  }
  0x3d   : > { %1951 = vsyncadd (%p46_p1), [#allocation10], 4294963136 }
  0x3e   : > { %1953 = dma.done.wait (%p46_p1), [#allocation13], 4096  }
  0x3f   : > { %1955 = vsyncadd (%p46_p1), [#allocation13], 4294963200  ;;  %v2161_v0 = vld [vmem:[%s293_s18] sm:$0xff]  ;;  %v1985_v1 = vmov 128.0   ;;  %v1986_v12 = vmov 127.0   ;;  %v1530_v13 = vld [vmem:[#allocation8 + $0x38] sm:$0xff] }
  0x40   : > { %351 = vadd.xlane.f32.xlu0 %v2161_v0  ;;  %1704 = vrcp.f32 %v1985_v1  ;;  %459 = vmatpush.bf16.msra.mxu0 %v1530_v13  ;;  %v1529_v14 = vld [vmem:[#allocation8 + $0x30] sm:$0xff]  ;;  %v1528_v17 = vld [vmem:[#allocation8 + $0x28] sm:$0xff]  ;;  %v1527_v19 = vld [vmem:[#allocation8 + $0x20] sm:$0xff]  ;;  %s1520_s29 = sshll.u32 %s2046_s28, 3  ;;  %s347_s15 = scalar_lea.vmem [#allocation14], %s1224_s13 }
  0x41   : > { %1706 = vrcp.f32 %v1986_v12  ;;  %v1526_v21 = vld [vmem:[#allocation8 + $0x18] sm:$0xff]  ;;  %v1525_v23 = vld [vmem:[#allocation8 + $0x10] sm:$0xff]  ;;  %v1524_v25 = vld [vmem:[#allocation8 + $0x8] sm:$0xff]  ;;  %s1090_s14 = scalar_lea.hbm %s2225_s6, %s1520_s29  ;;  %s1092_s16 = sshll.u32 %s347_s15, 4  ;;  %s1093_s16 = int_to_ptr.vmem [resolvable:$true] %s1092_s16 }
  0x42   : > { %v1523_v28 = vld [vmem:[#allocation8] sm:$0xff]  ;;  %v1698_v40 = vld [vmem:[#allocation6] ss:$0 sm:$0xff]  ;;  %v1699_v43 = vld [vmem:[#allocation6 + $0x1] ss:$0 sm:$0xff]  ;;  %s1094_s19 = sshll.u32 %s1090_s14, 4  ;;  %s1095_s19 = int_to_ptr.hbm [resolvable:$true] %s1094_s19 }
  0x43   : > { %v1700_v47 = vld [vmem:[#allocation6 + $0x2] ss:$0 sm:$0xff]  ;;  %v1377_v56 = vld [vmem:[#allocation9 + $0xe0] sm:$0xf]  ;;  %v1561_v57 = vld [vmem:[#allocation9 + $0xec] sm:$0xf0] }
  0x44   : > { %460 = vmatpush.bf16.msra.mxu0 %v1529_v14  ;;  %v1559_v58 = vld [vmem:[#allocation9 + $0xe4] sm:$0xf]  ;;  %v1378_v59 = vor.u32 %v1561_v57, %v1377_v56  ;;  %v1379_v60 = vld [vmem:[#allocation9 + $0xf0] sm:$0xf0]  ;;  %v1385_v61 = vld [vmem:[#allocation9 + $0xe8] sm:$0xf] }
  0x45   : > { %v1562_v62 = vld [vmem:[#allocation9 + $0xf4] sm:$0xf0]  ;;  %v1382_v63 = vor.u32 %v1559_v58, %v1379_v60  ;;  %v1560_v1 = vld [vmem:[#allocation9 + $0xec] sm:$0xf]  ;;  %v1371_v14 = vld [vmem:[#allocation9 + $0xd8] sm:$0xf0] }
  0x46   : > { %v1705_v2 = vpop.eup %1704  ;;  %707 = vmatpush.bf16.msra.mxu1 %v1378_v59  ;;  %v1556_v13 = vld [vmem:[#allocation9 + $0xcc] sm:$0xf]  ;;  %v1539_v57 = vld [vmem:[#allocation9 + $0x44] sm:$0xf]  ;;  %v1299_v58 = vld [vmem:[#allocation9 + $0x50] sm:$0xf0] }
  0x47   : > { %v354_v3 = vmul.f32 128.0, %v1705_v2  ;;  %vm358_vm0 = vweird.f32 %v1705_v2  ;;  %v1707_v15 = vpop.eup %1706  ;;  %720 = vmatpush.bf16.msra.mxu2 %v1382_v63  ;;  %v1305_v59 = vld [vmem:[#allocation9 + $0x48] sm:$0xf]  ;;  %v1307_v63 = vld [vmem:[#allocation9 + $0x58] sm:$0xf0]  ;;  %s1080_s28 = scalar_lea.sflag [#allocation5], %s2139_s26 }
  0x48   : > { %v366_v16 = vmul.f32 127.0, %v1707_v15  ;;  %461 = vmatpush.bf16.msra.mxu0 %v1528_v17  ;;  %vm370_vm1 = vweird.f32 %v1707_v15  ;;  %v1553_v17 = vld [vmem:[#allocation9 + $0xac] sm:$0xf0]  ;;  %s1910_s8 = sshra.s32 %s1095_s19, 4  ;;  %s1916_s13 = scalar_lea.hbm %s2225_s6, 16  ;;  %s1911_s8 = int_to_ptr.hbm [resolvable:$true] %s1910_s8 }
  0x49   : > { %v355_v4 = vsub.f32 1.0, %v354_v3  ;;  %s1912_s27 = scalar_lea.hbm %s1911_s8, 8  ;;  %p1917_p12 = scmp.lt.s32.totalorder %s1911_s8, %s2225_s6 }
  0x4a   : > { %v367_v18 = vsub.f32 1.0, %v366_v16  ;;  %v1345_v16 = vld [vmem:[#allocation9 + $0xa0] sm:$0xf]  ;;  %p1913_p1 = scmp.ne.s32.totalorder %s1911_s8, %s1912_s27  ;;  %p1918_p8 = scmp.lt.s32.totalorder %s1916_s13, %s1912_s27 }
  0x4b   : > { %v356_v5 = vmul.f32 %v1705_v2, %v355_v4  ;;  %v1361_v4 = vld [vmem:[#allocation9 + $0xc0] sm:$0xf] }
  0x4c   : > { %v368_v20 = vmul.f32 %v1707_v15, %v367_v18  ;;  %462 = vmatpush.bf16.msra.mxu0 %v1527_v19  ;;  %v1551_v18 = vld [vmem:[#allocation9 + $0xa4] sm:$0xf]  ;;  %v1346_v19 = vor.u32 %v1553_v17, %v1345_v16  ;;  %p1914_p3 = pnand %p1913_p1, %p2108_p13  ;;  %p1919_p7 = por %p1918_p8, %p1917_p12 }
  0x4d   : > { %v357_v6 = vadd.f32 %v1705_v2, %v356_v5  ;;  %v1557_v5 = vld [vmem:[#allocation9 + $0xcc] sm:$0xf0]  ;;  %v1531_v16 = vld [vmem:[#allocation9 + $0x4] sm:$0xf] }
  0x4e   : > { %v369_v22 = vadd.f32 %v1707_v15, %v368_v20  ;;  %v1347_v20 = vld [vmem:[#allocation9 + $0xb0] sm:$0xf0]  ;;  %p1915_p4 = pneg %p1914_p3 }
  0x4f   : > { %v2164_v7 = vsel %vm358_vm0, %v1705_v2, %v357_v6  ;;  %v1387_v2 = vld [vmem:[#allocation9 + $0xf8] sm:$0xf0]  ;;  %v1555_v6 = vld [vmem:[#allocation9 + $0xc4] sm:$0xf] }
  0x50   : > { %463 = vmatpush.bf16.msra.mxu0 %v1526_v21  ;;  %v2168_v24 = vsel %vm370_vm1, %v1707_v15, %v369_v22  ;;  %v1390_v3 = vor.u32 %v1560_v1, %v1387_v2  ;;  %v1374_v15 = vor.u32 %v1556_v13, %v1371_v14  ;;  %v1353_v21 = vld [vmem:[#allocation9 + $0xa8] sm:$0xf]  ;;  %v1554_v22 = vld [vmem:[#allocation9 + $0xb4] sm:$0xf0]  ;;  %v1281_v2 = vld [vmem:[#allocation9 + $0x20] sm:$0xf]  ;;  %p1920_p9 = pnand %p1919_p7, %p1915_p4 }
  0x51   : > { %v1265_v14 = vld [vmem:[#allocation9] sm:$0xf] }
  0x54   : > { %464 = vmatpush.bf16.msra.mxu0 %v1525_v23  ;;  %v1350_v23 = vor.u32 %v1551_v18, %v1347_v20  ;;  %v1273_v20 = vld [vmem:[#allocation9 + $0x8] sm:$0xf] }
  0x58   : > { %465 = vmatpush.bf16.msra.mxu0 %v1524_v25  ;;  %v1354_v25 = vor.u32 %v1554_v22, %v1353_v21  ;;  %v1534_v21 = vld [vmem:[#allocation9 + $0x14] sm:$0xf0] }
  0x5c   : > { %466 = vmatpush.bf16.msra.mxu0 %v1523_v28 }
  0x60   : > { %746 = vmatpush.bf16.msrb.mxu0 %v1390_v3  ;;  %v1537_v3 = vld [vmem:[#allocation9 + $0x2c] sm:$0xf0] }
  0x64   : > { %747 = vmatpush.bf16.msrb.mxu0 %v1374_v15  ;;  %v1533_v15 = vld [vmem:[#allocation9 + $0xc] sm:$0xf0] }
  0xb3   : > { %v352_v8 = vpop.xlane.xlu0 %351 }
  0xb4   : > { %v360_v9 = vmul.f32 %v2164_v7, %v352_v8  ;;  %v1363_v8 = vld [vmem:[#allocation9 + $0xd0] sm:$0xf0] }
  0xb6   : > { %v361_v10 = vsub.f32 %v2161_v0, %v360_v9  ;;  %v1369_v9 = vld [vmem:[#allocation9 + $0xc8] sm:$0xf] }
  0xb8   : > { %v362_v11 = vmul.f32 %v361_v10, %v361_v10 }
  0xba   : > { %363 = vadd.xlane.f32.xlu0 %v362_v11  ;;  %v1366_v11 = vor.u32 %v1555_v6, %v1363_v8  ;;  %v1283_v6 = vld [vmem:[#allocation9 + $0x30] sm:$0xf0]  ;;  %v1538_v8 = vld [vmem:[#allocation9 + $0x34] sm:$0xf0] }
  0xbc   : > { %721 = vmatpush.bf16.msra.mxu2 %v1366_v11  ;;  %v1282_v11 = vor.u32 %v1537_v3, %v1281_v2  ;;  %v1702_v3 = vld [vmem:[#allocation6 + $0x4] ss:$0 sm:$0xff] }
  0xc0   : > { %722 = vmatpush.bf16.msra.mxu2 %v1350_v23  ;;  %v1532_v23 = vld [vmem:[#allocation9 + $0xc] sm:$0xf] }
 0x12d   : > { %v364_v26 = vpop.xlane.xlu0 %363 }
 0x12e   : > { %v372_v27 = vmul.f32 %v2168_v24, %v364_v26  ;;  %v1552_v26 = vld [vmem:[#allocation9 + $0xac] sm:$0xf] }
 0x130   : > { %1708 = vrsqrt.f32 %v372_v27  ;;  %vm380_vm2 = vcmp.eq.f32.partialorder %v372_v27, inf  ;;  %v383_v36 = vand.u32 2147483648, %v372_v27  ;;  %vm382_vm3 = vcmp.eq.f32.partialorder %v372_v27, 0.0 }
 0x136   : > { %v1709_v29 = vpop.eup %1708 }
 0x137   : > { %v374_v30 = vmul.f32 %v1709_v29, %v372_v27 }
 0x139   : > { %v375_v31 = vmul.f32 %v1709_v29, %v374_v30  ;;  %v1549_v30 = vld [vmem:[#allocation9 + $0x8c] sm:$0xf0] }
 0x13b   : > { %v376_v32 = vmul.f32 0.5, %v375_v31  ;;  %v1547_v31 = vld [vmem:[#allocation9 + $0x84] sm:$0xf] }
 0x13d   : > { %v377_v33 = vsub.f32 1.5, %v376_v32 }
 0x13f   : > { %v378_v34 = vmul.f32 %v1709_v29, %v377_v33  ;;  %v1329_v29 = vld [vmem:[#allocation9 + $0x80] sm:$0xf]  ;;  %v1331_v33 = vld [vmem:[#allocation9 + $0x90] sm:$0xf0] }
 0x140   : > { %v1330_v32 = vor.u32 %v1549_v30, %v1329_v29 }
 0x141   : > { %v379_v35 = vmul.f32 %v378_v34, %v372_v27  ;;  %v1337_v34 = vld [vmem:[#allocation9 + $0x88] sm:$0xf] }
 0x143   : > { %v381_v37 = vsel %vm380_vm2, %v372_v27, %v379_v35  ;;  %v1355_v27 = vld [vmem:[#allocation9 + $0xb8] sm:$0xf0]  ;;  %v1550_v35 = vld [vmem:[#allocation9 + $0x94] sm:$0xf0] }
 0x144   : > { %v384_v38 = vsel %vm382_vm3, %v383_v36, %v381_v37  ;;  %v1358_v28 = vor.u32 %v1552_v26, %v1355_v27  ;;  %v1334_v36 = vor.u32 %v1547_v31, %v1331_v33  ;;  %v1338_v37 = vor.u32 %v1550_v35, %v1337_v34  ;;  %v1594_v33 = vld [vmem:[#allocation12 + $0xf8] sm:$0xff] }
 0x145   : > { %v385_v39 = vadd.f32 1e-06, %v384_v38  ;;  %v1548_v38 = vld [vmem:[#allocation9 + $0x8c] sm:$0xf]  ;;  %v1266_v26 = vor.u32 %v1533_v15, %v1265_v14  ;;  %v1586_v34 = vld [vmem:[#allocation12 + $0xb8] sm:$0xff]  ;;  %v1571_v14 = vld [vmem:[#allocation12 + $0x40] sm:$0xff] }
 0x146   : > { %748 = vmatpush.bf16.msrb.mxu0 %v1358_v28  ;;  %723 = vmatpush.bf16.msra.mxu2 %v1334_v36  ;;  %v1274_v28 = vor.u32 %v1534_v21, %v1273_v20  ;;  %v1569_v36 = vld [vmem:[#allocation12 + $0x30] sm:$0xff]  ;;  %v1579_v15 = vld [vmem:[#allocation12 + $0x80] sm:$0xff] }
 0x147   : > { %1710 = vrcp.f32 %v385_v39  ;;  %v1339_v39 = vld [vmem:[#allocation9 + $0x98] sm:$0xf0] }
 0x14d   : > { %v1711_v41 = vpop.eup %1710 }
 0x14e   : > { %v387_v42 = vmul.f32 %v1711_v41, %v361_v10  ;;  %v1558_v10 = vld [vmem:[#allocation9 + $0xd4] sm:$0xf0]  ;;  %v1342_v41 = vor.u32 %v1548_v38, %v1339_v39 }
 0x14f   : > { %v1370_v12 = vor.u32 %v1558_v10, %v1369_v9  ;;  %v1536_v9 = vld [vmem:[#allocation9 + $0x2c] sm:$0xf]  ;;  %v1291_v10 = vld [vmem:[#allocation9 + $0x38] sm:$0xf0]  ;;  %v1577_v38 = vld [vmem:[#allocation12 + $0x70] sm:$0xff] }
 0x150   : > { %v389_v44 = vmul.f32 %v1698_v40, %v387_v42  ;;  %v1313_v40 = vld [vmem:[#allocation9 + $0x60] sm:$0xf]  ;;  %v1545_v42 = vld [vmem:[#allocation9 + $0x6c] sm:$0xf0]  ;;  %749 = vmatpush.bf16.msrb.mxu0 %v1342_v41  ;;  %v1294_v18 = vor.u32 %v1536_v9, %v1291_v10  ;;  %v1585_v39 = vld [vmem:[#allocation12 + $0xb0] sm:$0xff] }
 0x151   : > { %v1573_v9 = vld [vmem:[#allocation12 + $0x50] sm:$0xff] }
 0x152   : > { %v391_v45 = vadd.f32 %v1699_v43, %v389_v44  ;;  %v1543_v43 = vld [vmem:[#allocation9 + $0x64] sm:$0xf]  ;;  %v1315_v44 = vld [vmem:[#allocation9 + $0x70] sm:$0xf0] }
 0x153   : > { %v1581_v10 = vld [vmem:[#allocation12 + $0x90] sm:$0xff] }
 0x154   : > { %v392_v46 = vpack.c.bf16 %v391_v45, %v391_v45  ;;  %v1314_v45 = vor.u32 %v1545_v42, %v1313_v40  ;;  %v1568_v42 = vld [vmem:[#allocation12 + $0x28] sm:$0xff] }
 0x156   : > { %467 = vmatmul.bf16.vlgmr.msra.gmra.mxu0 %v392_v46  ;;  %v1318_v46 = vor.u32 %v1543_v43, %v1315_v44  ;;  %v1592_v43 = vld [vmem:[#allocation12 + $0xe8] sm:$0xff] }
 0x157   : > { %v1576_v44 = vld [vmem:[#allocation12 + $0x68] sm:$0xff] }
 0x158   : > { %724 = vmatpush.bf16.msra.mxu2 %v1318_v46 }
 0x1d3   : > { %v468_v48 = vpop.f32.mrf.mxu0 }
 0x1d4   : > { %v469_v49 = vadd.f32 %v1700_v47, %v468_v48  ;;  %v1321_v47 = vld [vmem:[#allocation9 + $0x68] sm:$0xf]  ;;  %v1546_v48 = vld [vmem:[#allocation9 + $0x74] sm:$0xf0] }
 0x1d6   : > { %v2172_v50 = vadd.f32 %v469_v49, %v2161_v0  ;;  %v1386_v0 = vor.u32 %v1562_v62, %v1385_v61  ;;  %v1544_v49 = vld [vmem:[#allocation9 + $0x6c] sm:$0xf]  ;;  %v1542_v61 = vld [vmem:[#allocation9 + $0x54] sm:$0xf0] }
 0x1d7   : > { %v1540_v62 = vld [vmem:[#allocation9 + $0x4c] sm:$0xf]  ;;  %v1306_v1 = vor.u32 %v1542_v61, %v1305_v59  ;;  %v1590_v59 = vld [vmem:[#allocation12 + $0xd8] sm:$0xff] }
 0x1d8   : > { %477 = vadd.xlane.f32.xlu1 %v2172_v50  ;;  %733 = vmatpush.bf16.msra.mxu3 %v1386_v0  ;;  %v1302_v0 = vor.u32 %v1539_v57, %v1299_v58  ;;  %v1566_v58 = vld [vmem:[#allocation12 + $0x18] sm:$0xff] }
 0x1d9   : > { %v1582_v61 = vld [vmem:[#allocation12 + $0x98] sm:$0xff] }
 0x1da   : > { %725 = vmatpush.bf16.msra.mxu2 %v1302_v0  ;;  %v1701_v0 = vld [vmem:[#allocation6 + $0x3] ss:$0 sm:$0xff] }
 0x1db   : > { %v470_v51 = vpop.f32.mrf.mxu0 }
 0x1dc   : > { %734 = vmatpush.bf16.msra.mxu3 %v1370_v12  ;;  %v1322_v51 = vor.u32 %v1546_v48, %v1321_v47  ;;  %v1567_v48 = vld [vmem:[#allocation12 + $0x20] sm:$0xff] }
 0x1e0   : > { %735 = vmatpush.bf16.msra.mxu3 %v1354_v25  ;;  %v1275_v25 = vld [vmem:[#allocation9 + $0x18] sm:$0xf0] }
 0x1e1   : > { %v1278_v29 = vor.u32 %v1532_v23, %v1275_v25 }
 0x1e4   : > { %736 = vmatpush.bf16.msra.mxu3 %v1338_v37  ;;  %v1593_v37 = vld [vmem:[#allocation12 + $0xf0] sm:$0xff] }
 0x1e8   : > { %737 = vmatpush.bf16.msra.mxu3 %v1322_v51 }
 0x1ec   : > { %738 = vmatpush.bf16.msra.mxu3 %v1306_v1 }
 0x24b   : > { %v478_v52 = vpop.xlane.xlu1 %477 }
 0x24c   : > { %v479_v53 = vmul.f32 %v478_v52, %v2164_v7  ;;  %v1362_v7 = vor.u32 %v1557_v5, %v1361_v4  ;;  %v1323_v52 = vld [vmem:[#allocation9 + $0x78] sm:$0xf0]  ;;  %v1535_v4 = vld [vmem:[#allocation9 + $0x24] sm:$0xf]  ;;  %v1310_v5 = vor.u32 %v1540_v62, %v1307_v63  ;;  %v1565_v62 = vld [vmem:[#allocation12 + $0x10] sm:$0xff] }
 0x24d   : > { %v1326_v56 = vor.u32 %v1544_v49, %v1323_v52  ;;  %v1286_v12 = vor.u32 %v1535_v4, %v1283_v6  ;;  %v1591_v49 = vld [vmem:[#allocation12 + $0xe0] sm:$0xff]  ;;  %v1589_v63 = vld [vmem:[#allocation12 + $0xd0] sm:$0xff] }
 0x24e   : > { %v2177_v54 = vsub.f32 %v2172_v50, %v479_v53  ;;  %708 = vmatpush.bf16.msra.mxu1 %v1362_v7  ;;  %v1297_v53 = vld [vmem:[#allocation9 + $0x40] sm:$0xf]  ;;  %v1289_v7 = vld [vmem:[#allocation9 + $0x28] sm:$0xf] }
 0x24f   : > { %750 = vmatpush.bf16.msrb.mxu0 %v1326_v56  ;;  %v1290_v13 = vor.u32 %v1538_v8, %v1289_v7  ;;  %726 = vmatpush.bf16.msra.mxu2 %v1286_v12  ;;  %v1575_v52 = vld [vmem:[#allocation12 + $0x60] sm:$0xff]  ;;  %v1564_v7 = vld [vmem:[#allocation12 + $0x8] sm:$0xff] }
 0x250   : > { %v481_v55 = vmul.f32 %v2177_v54, %v2177_v54  ;;  %v1588_v8 = vld [vmem:[#allocation12 + $0xc8] sm:$0xff]  ;;  %v1587_v12 = vld [vmem:[#allocation12 + $0xc0] sm:$0xff] }
 0x251   : > { %739 = vmatpush.bf16.msra.mxu3 %v1290_v13  ;;  %v1580_v13 = vld [vmem:[#allocation12 + $0x88] sm:$0xff] }
 0x252   : > { %482 = vadd.xlane.f32.xlu1 %v481_v55  ;;  %709 = vmatpush.bf16.msra.mxu1 %v1346_v19  ;;  %v1541_v55 = vld [vmem:[#allocation9 + $0x4c] sm:$0xf0]  ;;  %v1267_v19 = vld [vmem:[#allocation9 + $0x10] sm:$0xf0] }
 0x253   : > { %v1298_v60 = vor.u32 %v1541_v55, %v1297_v53  ;;  %751 = vmatpush.bf16.msrb.mxu0 %v1310_v5  ;;  %v1270_v27 = vor.u32 %v1531_v16, %v1267_v19  ;;  %v1583_v53 = vld [vmem:[#allocation12 + $0xa0] sm:$0xff]  ;;  %v537_v16 = vld [vmem:[#allocation11] sm:$0xf] }
 0x254   : > { %v540_v25 = vperm.slane %v537_v16, 1 }
 0x255   : > { %727 = vmatpush.bf16.msra.mxu2 %v1270_v27  ;;  %740 = vmatpush.bf16.msra.mxu3 %v1274_v28  ;;  %v541_v27 = vperm.slane %v537_v16, 2 }
 0x256   : > { %710 = vmatpush.bf16.msra.mxu1 %v1330_v32  ;;  %v1570_v32 = vld [vmem:[#allocation12 + $0x38] sm:$0xff] }
 0x257   : > { %752 = vmatpush.bf16.msrb.mxu0 %v1294_v18  ;;  %v542_v18 = vperm.slane %v537_v16, 3 }
 0x259   : > { %1051 = vmatpush.bf16.msrb.mxu3 %v1586_v34 }
 0x25a   : > { %711 = vmatpush.bf16.msra.mxu1 %v1314_v45  ;;  %v1584_v45 = vld [vmem:[#allocation12 + $0xa8] sm:$0xff] }
 0x25b   : > { %753 = vmatpush.bf16.msrb.mxu0 %v1278_v29 }
 0x25d   : > { %1052 = vmatpush.bf16.msrb.mxu3 %v1585_v39 }
 0x25e   : > { %712 = vmatpush.bf16.msra.mxu1 %v1298_v60  ;;  %v1574_v60 = vld [vmem:[#allocation12 + $0x58] sm:$0xff] }
 0x25f   : > { %1064 = vmatpush.bf16.msra.mxu0 %v1594_v33 }
 0x261   : > { %1053 = vmatpush.bf16.msrb.mxu3 %v1584_v45 }
 0x262   : > { %713 = vmatpush.bf16.msra.mxu1 %v1282_v11  ;;  %v1563_v11 = vld [vmem:[#allocation12] sm:$0xff] }
 0x263   : > { %1065 = vmatpush.bf16.msra.mxu0 %v1593_v37 }
 0x265   : > { %1054 = vmatpush.bf16.msrb.mxu3 %v1583_v53 }
 0x266   : > { %714 = vmatpush.bf16.msra.mxu1 %v1266_v26 }
 0x267   : > { %1066 = vmatpush.bf16.msra.mxu0 %v1592_v43  ;;  %v1703_v43 = vld [vmem:[#allocation6 + $0x5] ss:$0 sm:$0xff] }
 0x269   : > { %1055 = vmatpush.bf16.msrb.mxu3 %v1582_v61 }
 0x26a   : > { %1025 = vmatpush.bf16.msrb.mxu1 %v1570_v32 }
 0x26b   : > { %1067 = vmatpush.bf16.msra.mxu0 %v1591_v49 }
 0x26d   : > { %1056 = vmatpush.bf16.msrb.mxu3 %v1581_v10 }
 0x26e   : > { %1026 = vmatpush.bf16.msrb.mxu1 %v1569_v36 }
 0x26f   : > { %1068 = vmatpush.bf16.msra.mxu0 %v1590_v59 }
 0x271   : > { %1057 = vmatpush.bf16.msrb.mxu3 %v1580_v13 }
 0x272   : > { %1027 = vmatpush.bf16.msrb.mxu1 %v1568_v42 }
 0x273   : > { %1069 = vmatpush.bf16.msra.mxu0 %v1589_v63 }
 0x275   : > { %1058 = vmatpush.bf16.msrb.mxu3 %v1579_v15 }
 0x276   : > { %1028 = vmatpush.bf16.msrb.mxu1 %v1567_v48 }
 0x277   : > { %1070 = vmatpush.bf16.msra.mxu0 %v1588_v8 }
 0x27a   : > { %1029 = vmatpush.bf16.msrb.mxu1 %v1566_v58 }
 0x27b   : > { %1071 = vmatpush.bf16.msra.mxu0 %v1587_v12 }
 0x27e   : > { %1030 = vmatpush.bf16.msrb.mxu1 %v1565_v62 }
 0x282   : > { %1031 = vmatpush.bf16.msrb.mxu1 %v1564_v7 }
 0x286   : > { %1032 = vmatpush.bf16.msrb.mxu1 %v1563_v11 }
 0x2c5   : > { %v483_v17 = vpop.xlane.xlu1 %482 }
 0x2c6   : > { %v484_v22 = vmul.f32 %v483_v17, %v2168_v24  ;;  %v1578_v24 = vld [vmem:[#allocation12 + $0x78] sm:$0xff]  ;;  %v539_v17 = vperm.slane %v537_v16, 0 }
 0x2c7   : > { %1038 = vmatpush.bf16.msrb.mxu2 %v1578_v24 }
 0x2c8   : > { %1712 = vrsqrt.f32 %v484_v22  ;;  %vm492_vm4 = vcmp.eq.f32.partialorder %v484_v22, inf  ;;  %v495_v51 = vand.u32 2147483648, %v484_v22  ;;  %vm494_vm5 = vcmp.eq.f32.partialorder %v484_v22, 0.0 }
 0x2cb   : > { %1039 = vmatpush.bf16.msrb.mxu2 %v1577_v38 }
 0x2ce   : > { %v1713_v30 = vpop.eup %1712 }
 0x2cf   : > { %v486_v31 = vmul.f32 %v1713_v30, %v484_v22  ;;  %1040 = vmatpush.bf16.msrb.mxu2 %v1576_v44 }
 0x2d1   : > { %v487_v35 = vmul.f32 %v1713_v30, %v486_v31 }
 0x2d3   : > { %v488_v40 = vmul.f32 0.5, %v487_v35  ;;  %1041 = vmatpush.bf16.msrb.mxu2 %v1575_v52 }
 0x2d5   : > { %v489_v41 = vsub.f32 1.5, %v488_v40 }
 0x2d7   : > { %v490_v46 = vmul.f32 %v1713_v30, %v489_v41  ;;  %1042 = vmatpush.bf16.msrb.mxu2 %v1574_v60 }
 0x2d9   : > { %v491_v47 = vmul.f32 %v490_v46, %v484_v22 }
 0x2db   : > { %v493_v55 = vsel %vm492_vm4, %v484_v22, %v491_v47  ;;  %1043 = vmatpush.bf16.msrb.mxu2 %v1573_v9 }
 0x2dc   : > { %v496_v56 = vsel %vm494_vm5, %v495_v51, %v493_v55 }
 0x2dd   : > { %v497_v57 = vadd.f32 1e-06, %v496_v56 }
 0x2df   : > { %1714 = vrcp.f32 %v497_v57 }
 0x2e5   : > { %v1715_v1 = vpop.eup %1714 }
 0x2e6   : > { %v499_v2 = vmul.f32 %v1715_v1, %v2177_v54  ;;  %v1572_v54 = vld [vmem:[#allocation12 + $0x48] sm:$0xff] }
 0x2e7   : > { %1044 = vmatpush.bf16.msrb.mxu2 %v1572_v54 }
 0x2e8   : > { %v501_v4 = vmul.f32 %v1701_v0, %v499_v2 }
 0x2ea   : > { %v503_v5 = vadd.f32 %v1702_v3, %v501_v4 }
 0x2eb   : > { %1045 = vmatpush.bf16.msrb.mxu2 %v1571_v14 }
 0x2ec   : > { %v504_v6 = vpack.c.bf16 %v503_v5, %v503_v5 }
 0x2ee   : > { %715 = vmatmul.bf16.vlgmr.msra.gmra.mxu1 %v504_v6  ;;  %728 = vmatmul.bf16.vlgmr.msra.gmra.mxu2 %v504_v6 }
 0x2ef   : > { %741 = vmatmul.bf16.vlgmr.msra.gmra.mxu3 %v504_v6  ;;  %754 = vmatmul.bf16.vlgmr.msrb.gmra.mxu0 %v504_v6 }
 0x36b   : > { %v716_v19 = vpop.f32.mrf.mxu1 }
 0x36c   : > { %v717_v20 = vadd.f32 %v716_v19, %v539_v17  ;;  %v755_v21 = vpop.f32.mrf.mxu0 }
 0x36d   : > { %v756_v22 = vadd.f32 %v755_v21, %v542_v18 }
 0x36e   : > { %v759_v23 = vmax.f32 %v717_v20, 0.0 }
 0x36f   : > { %v762_v26 = vmax.f32 %v756_v22, 0.0 }
 0x370   : > { %v763_v28 = vpack.c.bf16 %v759_v23, %v759_v23 }
 0x371   : > { %v766_v29 = vpack.c.bf16 %v762_v26, %v762_v26  ;;  %v729_v30 = vpop.f32.mrf.mxu2 }
 0x372   : > { %v730_v31 = vadd.f32 %v729_v30, %v540_v25  ;;  %v742_v32 = vpop.f32.mrf.mxu3  ;;  %1033 = vmatmul.bf16.vlgmr.msrb.gmra.mxu1 %v763_v28 }
 0x373   : > { %v743_v33 = vadd.f32 %v742_v32, %v541_v27  ;;  %1072 = vmatmul.bf16.vlgmr.msra.gmra.mxu0 %v766_v29  ;;  %v718_v24 = vpop.f32.mrf.mxu1 }
 0x374   : > { %v760_v34 = vmax.f32 %v730_v31, 0.0  ;;  %v757_v35 = vpop.f32.mrf.mxu0 }
 0x375   : > { %v761_v36 = vmax.f32 %v743_v33, 0.0 }
 0x376   : > { %v764_v37 = vpack.c.bf16 %v760_v34, %v760_v34 }
 0x377   : > { %v765_v38 = vpack.c.bf16 %v761_v36, %v761_v36 }
 0x378   : > { %1046 = vmatmul.bf16.vlgmr.msrb.gmra.mxu2 %v764_v37 }
 0x379   : > { %1059 = vmatmul.bf16.vlgmr.msrb.gmra.mxu3 %v765_v38  ;;  %v731_v39 = vpop.f32.mrf.mxu2 }
 0x37a   : > { %v744_v40 = vpop.f32.mrf.mxu3 }
 0x3ef   : > { %v1034_v41 = vpop.f32.mrf.mxu1 }
 0x3f0   : > { %v1073_v42 = vpop.f32.mrf.mxu0  ;;  %v1035_v46 = vadd.f32 %v1703_v43, %v1034_v41 }
 0x3f7   : > { %v1036_v44 = vpop.f32.mrf.mxu1 }
 0x3f8   : > { %v1075_v45 = vpop.f32.mrf.mxu0 }
 0x3fb   : > { %v1047_v47 = vpop.f32.mrf.mxu2 }
 0x3fc   : > { %v1048_v48 = vadd.f32 %v1047_v47, %v1035_v46  ;;  %v1060_v49 = vpop.f32.mrf.mxu3 }
 0x3fe   : > { %v1061_v51 = vadd.f32 %v1060_v49, %v1048_v48 }
 0x400   : > { %v1074_v52 = vadd.f32 %v1073_v42, %v1061_v51 }
 0x402   : > { %v1077_v53 = vadd.f32 %v1074_v52, %v2172_v50 }
 0x403   : > { %v1049_v55 = vpop.f32.mrf.mxu2 }
 0x404   : > { %v1062_v56 = vpop.f32.mrf.mxu3  ;;  %1078 = vst [vmem:[%s347_s15] sm:$0xff] %v1077_v53 }
 0x405   : > { %1923 = shalt.err (!%p1920_p9)
}
 0x406   : > { %1617 = dma.vmem_to_hbm [thread:$0]  (%p2108_p13), %s1093_s16, 128, %s1095_s19, %s1080_s28  }
 0x407 PF: > { %s1106_s26 = sand.u32 1, %s1962_s21   ;;  %p2232_p10 = scmp.ge.s32.totalorder %s1974_s24, 2 }
 0x408   : > { %s1107_s29 = scalar_lea.sflag [#allocation5], %s1106_s26 }
 0x409   : > { %p1640_p11 = pnand %p2232_p10, %p2113_p5 }
 0x40b   : > { %p1641_p0 = pneg %p1640_p11 }
 0x40d   : > { %1957 = dma.done.wait (%p1641_p0), %s1107_s29, 128  }
 0x40e   : > { %1959 = vsyncadd (%p1641_p0), %s1107_s29, 4294967168  ;;  %p22_p2 = scmp.ge.s32.totalorder %s2088_s17, 4   ;;  %s2233_s21 = smov %s1966_s22 }
 0x40f   : > { %s2234_s22 = smov %s1970_s23  ;;  %s2235_s23 = smov %s2100_s20 }
 0x410   : > { %s2236_s24 = smov %s2088_s17  ;;  %24 = sbr.rel (!%p22_p2) target bundleno = 8 (0x8), region = 109 }
 0x415   :  { %1113 = vsyncpa [#allocation4], 1 }
 0x416   :  { %1115 = vsyncpa [#allocation4 + $0x1], 1 }
 0x417   :  { %1116 = vsyncpa [#allocation7], 1 }
 0x418   :  { %1117 = vsyncpa [#allocation10], 1 }
 0x419   :  { %1118 = vsyncpa [#allocation13], 1 }
 0x41a   :  { %1119 = vsyncpa [#allocation5], 1 }
 0x41b   :  { %1121 = vsyncpa [#allocation5 + $0x1], 1 }

</bundles_post_ra>
